<compile_context>
chip_gen: v7x
topology: tpu7x:2x2x1
jax: 0.10.0
libtpu: 0.0.40
codegen_flags: <defaults>
</compile_context>

<pallas_src>
import jax
import jax.numpy as jnp
from jax.experimental import pallas as pl
from jax.experimental.pallas import tpu as pltpu

INPUT_SIZE = 1664        # 13 * 128 -> lane-aligned
HIDDEN = 512
NUM_CLASSES = 38
PADDED_CLASSES = 128     # lane-pad the classifier output for unmasked stores


def _round_up(n, m):
    return ((n + m - 1) // m) * m


def _mlp_kernel(x_ref, w1_ref, b1_ref, w2_ref, b2_ref, o_ref):
    # Layer 1: cast the f32 activation tile to bf16 in-kernel (free under MXU),
    # then [tb, 1664] bf16 @ [1664, 512] bf16 -> f32 accumulate.
    x = x_ref[...].astype(jnp.bfloat16)
    h = jnp.dot(x, w1_ref[...], preferred_element_type=jnp.float32)
    h = jnp.maximum(h + b1_ref[...], 0.0)            # bias + ReLU in f32 (VPU)
    # Dropout(0.5) in eval mode == identity.
    # Layer 2: [tb, 512] bf16 @ [512, 128] bf16 -> f32 accumulate (N lane-padded).
    out = jnp.dot(h.astype(jnp.bfloat16), w2_ref[...],
                  preferred_element_type=jnp.float32)
    o_ref[...] = (out + b2_ref[...]).astype(o_ref.dtype)


def _tile_and_pad(x, batch_tile):
    """Pick a batch tile and (only for tiny batches) pad a few rows.

    Returns (x_maybe_padded, tb, original_B).
    """
    B = x.shape[0]
    if B > 16:
        # >= 2 grid steps (v7x megacore), tile a multiple of 16, capped by batch_tile.
        tb = min(_round_up(batch_tile, 16), _round_up(pl.cdiv(B, 2), 16))
        tb = max(tb, 16)
        return x, tb, B          # non-divisible last tile is masked by Pallas
    # Tiny batch: a single small tile; pad at most 7 rows (negligible copy).
    Bp = _round_up(B, 8)
    if Bp != B:
        x = jnp.pad(x, ((0, Bp - B), (0, 0)))
    return x, Bp, B


def make_feature_classifier(w1, b1, w2, b2, *, batch_tile=512):
    """One-time weight preprocessing; returns `apply(x) -> [B, 38]` logits.

    w1: [1664, 512], b1: [512] or [1, 512], w2: [512, 38], b2: [38] or [1, 38].
    Weights are lane-padded / cast to bf16 exactly once and kept on device, so
    per-call HBM traffic is only the x stream and the output.
    """
    w1 = jnp.asarray(w1, jnp.float32)
    w2 = jnp.asarray(w2, jnp.float32)
    b1_f = jnp.asarray(b1, jnp.float32).reshape(1, HIDDEN)
    b2_f = jnp.asarray(b2, jnp.float32).reshape(1, NUM_CLASSES)

    # Lane-pad the second GEMM's N dim 38 -> 128 with zero columns.
    w2p = jnp.zeros((HIDDEN, PADDED_CLASSES), jnp.float32).at[:, :NUM_CLASSES].set(w2)
    b2p = jnp.zeros((1, PADDED_CLASSES), jnp.float32).at[:, :NUM_CLASSES].set(b2_f)

    # bf16 matmul operands, f32 biases; materialize once.
    w1_bf = w1.astype(jnp.bfloat16)
    w2_bf = w2p.astype(jnp.bfloat16)
    w1_bf, b1_f, w2_bf, b2p = jax.block_until_ready((w1_bf, b1_f, w2_bf, b2p))

    def apply(x):
        assert x.ndim == 2 and x.shape[1] == INPUT_SIZE, x.shape
        x_in, tb, B = _tile_and_pad(x, batch_tile)
        Bk = x_in.shape[0]                       # rows the kernel output covers
        grid = (pl.cdiv(Bk, tb),)

        flops = 2 * Bk * (INPUT_SIZE * HIDDEN + HIDDEN * PADDED_CLASSES)
        bytes_accessed = (
            Bk * INPUT_SIZE * x_in.dtype.itemsize      # x stream
            + INPUT_SIZE * HIDDEN * 2                  # W1 (bf16, resident)
            + HIDDEN * PADDED_CLASSES * 2              # W2 (bf16, resident)
            + HIDDEN * 4 + PADDED_CLASSES * 4          # biases (f32)
            + Bk * PADDED_CLASSES * 4                  # output (f32)
        )

        out = pl.pallas_call(
            _mlp_kernel,
            out_shape=jax.ShapeDtypeStruct((Bk, PADDED_CLASSES), jnp.float32),
            grid_spec=pltpu.PrefetchScalarGridSpec(
                num_scalar_prefetch=0,
                grid=grid,
                in_specs=[
                    pl.BlockSpec((tb, INPUT_SIZE), lambda i: (i, 0)),          # x tile (f32, cast in-kernel)
                    pl.BlockSpec((INPUT_SIZE, HIDDEN), lambda i: (0, 0)),       # W1 (resident)
                    pl.BlockSpec((1, HIDDEN), lambda i: (0, 0)),                # b1
                    pl.BlockSpec((HIDDEN, PADDED_CLASSES), lambda i: (0, 0)),   # W2 (resident, N-padded)
                    pl.BlockSpec((1, PADDED_CLASSES), lambda i: (0, 0)),        # b2 (N-padded)
                ],
                out_specs=pl.BlockSpec((tb, PADDED_CLASSES), lambda i: (i, 0)),  # lane-dense output
            ),
            compiler_params=pltpu.CompilerParams(
                dimension_semantics=("parallel",),   # batch axis shards across TCs (v7x)
            ),
            cost_estimate=pl.CostEstimate(
                flops=flops, transcendentals=0, bytes_accessed=bytes_accessed),
        )(x_in, w1_bf, b1_f, w2_bf, b2p)

        return out[:B, :NUM_CLASSES]

    return apply


def init_params(key):
    """Deterministic init mimicking nn.Linear's U(-1/sqrt(fan_in), 1/sqrt(fan_in))."""
    k1, k2, k3, k4 = jax.random.split(key, 4)
    bound1 = 1.0 / jnp.sqrt(INPUT_SIZE)
    bound2 = 1.0 / jnp.sqrt(HIDDEN)
    w1 = jax.random.uniform(k1, (INPUT_SIZE, HIDDEN), jnp.float32, -bound1, bound1)
    b1 = jax.random.uniform(k2, (1, HIDDEN), jnp.float32, -bound1, bound1)
    w2 = jax.random.uniform(k3, (HIDDEN, NUM_CLASSES), jnp.float32, -bound2, bound2)
    b2 = jax.random.uniform(k4, (1, NUM_CLASSES), jnp.float32, -bound2, bound2)
    return w1, b1, w2, b2


def _reference(x, w1, b1, w2, b2):
    """Pure-JAX reference with the same bf16-input / f32-accumulate numerics."""
    h = jnp.dot(x.astype(jnp.bfloat16), w1.astype(jnp.bfloat16),
                preferred_element_type=jnp.float32) + b1
    h = jnp.maximum(h, 0.0)
    return jnp.dot(h.astype(jnp.bfloat16), w2.astype(jnp.bfloat16),
                   preferred_element_type=jnp.float32) + b2


if __name__ == "__main__":
    key = jax.random.PRNGKey(0)
    kx1, kx2, kp = jax.random.split(key, 3)
    w1, b1, w2, b2 = init_params(kp)

    # Weight prep happens once here, not per forward call.
    classifier = make_feature_classifier(w1, b1, w2, b2)

    # Small batch (tiny-tile path: tb=8, grid=(1,)).
    B1 = 8
    x1 = jax.random.normal(kx1, (B1, INPUT_SIZE), jnp.float32)
    out1 = jax.block_until_ready(classifier(x1))
    ref1 = _reference(x1, w1, b1, w2, b2)
    assert out1.shape == (B1, NUM_CLASSES)
    assert jnp.allclose(out1, ref1, atol=5e-3, rtol=5e-3)

    # Non-divisible batch: 2-step parallel grid with a masked partial last tile.
    B2 = 260
    x2 = jax.random.normal(kx2, (B2, INPUT_SIZE), jnp.float32)
    out2 = jax.block_until_ready(classifier(x2))
    ref2 = _reference(x2, w1, b1, w2, b2)
    assert out2.shape == (B2, NUM_CLASSES)
    assert jnp.allclose(out2, ref2, atol=5e-3, rtol=5e-3)

    print("KERNEL_OK")
</pallas_src>

<mosaic_0001>
module attributes {stable_mosaic.version = 11 : i64} {
  func.func @_mlp_kernel(%arg0: i32, %arg1: memref<8x1664xf32, #tpu.memory_space<vmem>>, %arg2: memref<1664x512xbf16, #tpu.memory_space<vmem>>, %arg3: memref<1x512xf32, #tpu.memory_space<vmem>>, %arg4: memref<512x128xbf16, #tpu.memory_space<vmem>>, %arg5: memref<1x128xf32, #tpu.memory_space<vmem>>, %arg6: memref<8x128xf32, #tpu.memory_space<vmem>>) attributes {dimension_semantics = [#tpu.dimension_semantics<parallel>], iteration_bounds = array<i64: 1>, scalar_prefetch = 0 : i64, scratch_operands = 0 : i64, tpu.core_type = #tpu.core_type<tc>, window_params = [{transform_indices = @transform_0, window_bounds = array<i64: 8, 1664>}, {pipeline_mode = #tpu.pipeline_mode<synchronous>, transform_indices = @transform_1, window_bounds = array<i64: 1664, 512>}, {pipeline_mode = #tpu.pipeline_mode<synchronous>, transform_indices = @transform_2, window_bounds = array<i64: 1, 512>}, {pipeline_mode = #tpu.pipeline_mode<synchronous>, transform_indices = @transform_3, window_bounds = array<i64: 512, 128>}, {pipeline_mode = #tpu.pipeline_mode<synchronous>, transform_indices = @transform_4, window_bounds = array<i64: 1, 128>}, {transform_indices = @transform_5, window_bounds = array<i64: 8, 128>}]} {
    %c0 = arith.constant 0 : index
    %c0_0 = arith.constant 0 : index
    %0 = vector.load %arg1[%c0, %c0_0] : memref<8x1664xf32, #tpu.memory_space<vmem>>, vector<8x1664xf32>
    %1 = arith.truncf %0 : vector<8x1664xf32> to vector<8x1664xbf16>
    %c0_1 = arith.constant 0 : index
    %c0_2 = arith.constant 0 : index
    %2 = vector.load %arg2[%c0_1, %c0_2] : memref<1664x512xbf16, #tpu.memory_space<vmem>>, vector<1664x512xbf16>
    %cst = arith.constant dense<0.000000e+00> : vector<8x512xf32>
    %3 = tpu.matmul %1, %2, %cst {dimension_numbers = #tpu.dot_dimension_numbers<[1], [0], [0], [1], [0, 0, 1, 1], [], []>} : vector<8x1664xbf16>, vector<1664x512xbf16>, vector<8x512xf32> -> vector<8x512xf32>
    %c0_3 = arith.constant 0 : index
    %c0_4 = arith.constant 0 : index
    %4 = vector.load %arg3[%c0_3, %c0_4] : memref<1x512xf32, #tpu.memory_space<vmem>>, vector<1x512xf32>
    %5 = vector.broadcast %4 : vector<1x512xf32> to vector<8x512xf32>
    %6 = arith.addf %3, %5 : vector<8x512xf32>
    %cst_5 = arith.constant 0.000000e+00 : f32
    %7 = vector.broadcast %cst_5 : f32 to vector<8x512xf32>
    %8 = arith.maximumf %6, %7 : vector<8x512xf32>
    %9 = arith.truncf %8 : vector<8x512xf32> to vector<8x512xbf16>
    %c0_6 = arith.constant 0 : index
    %c0_7 = arith.constant 0 : index
    %10 = vector.load %arg4[%c0_6, %c0_7] : memref<512x128xbf16, #tpu.memory_space<vmem>>, vector<512x128xbf16>
    %cst_8 = arith.constant dense<0.000000e+00> : vector<8x128xf32>
    %11 = tpu.matmul %9, %10, %cst_8 {dimension_numbers = #tpu.dot_dimension_numbers<[1], [0], [0], [1], [0, 0, 1, 1], [], []>} : vector<8x512xbf16>, vector<512x128xbf16>, vector<8x128xf32> -> vector<8x128xf32>
    %c0_9 = arith.constant 0 : index
    %c0_10 = arith.constant 0 : index
    %12 = vector.load %arg5[%c0_9, %c0_10] : memref<1x128xf32, #tpu.memory_space<vmem>>, vector<1x128xf32>
    %13 = vector.broadcast %12 : vector<1x128xf32> to vector<8x128xf32>
    %14 = arith.addf %11, %13 : vector<8x128xf32>
    %c0_11 = arith.constant 0 : index
    %c0_12 = arith.constant 0 : index
    %15 = vector.load %arg6[%c0_11, %c0_12] : memref<8x128xf32, #tpu.memory_space<vmem>>, vector<8x128xf32>
    tpu.vector_store %arg6[%c0_11, %c0_12], %14 {strides = array<i32>} : memref<8x128xf32, #tpu.memory_space<vmem>>, vector<8x128xf32>,
    return
  }
  func.func @transform_0(%arg0: i32) -> (i32, i32) {
    %c0_i32 = arith.constant 0 : i32
    %c0_i32_0 = arith.constant 0 : i32
    return %arg0, %c0_i32 : i32, i32
  }
  func.func @transform_1(%arg0: i32) -> (i32, i32) {
    %c0_i32 = arith.constant 0 : i32
    %c0_i32_0 = arith.constant 0 : i32
    %c0_i32_1 = arith.constant 0 : i32
    return %c0_i32, %c0_i32_0 : i32, i32
  }
  func.func @transform_2(%arg0: i32) -> (i32, i32) {
    %c0_i32 = arith.constant 0 : i32
    %c0_i32_0 = arith.constant 0 : i32
    %c0_i32_1 = arith.constant 0 : i32
    return %c0_i32, %c0_i32_0 : i32, i32
  }
  func.func @transform_3(%arg0: i32) -> (i32, i32) {
    %c0_i32 = arith.constant 0 : i32
    %c0_i32_0 = arith.constant 0 : i32
    %c0_i32_1 = arith.constant 0 : i32
    return %c0_i32, %c0_i32_0 : i32, i32
  }
  func.func @transform_4(%arg0: i32) -> (i32, i32) {
    %c0_i32 = arith.constant 0 : i32
    %c0_i32_0 = arith.constant 0 : i32
    %c0_i32_1 = arith.constant 0 : i32
    return %c0_i32, %c0_i32_0 : i32, i32
  }
  func.func @transform_5(%arg0: i32) -> (i32, i32) {
    %c0_i32 = arith.constant 0 : i32
    %c0_i32_0 = arith.constant 0 : i32
    return %arg0, %c0_i32 : i32, i32
  }
}

</mosaic_0001>

<bundles_post_ra>
// kernel: tpu_custom_call.1
= control target key start
LH: loop header
LB: loop body
LE: loop exit
PB: predicated region body
PF: predicated region fallthrough
CT: control target
= control target key end

     0   :  { %10 = vsyncpa [#allocation3], 0  ;;  %s5036_s0 = inlined_call_operand.hbm [shape: f32[8,1664], index: 0, kind: input, shape index: {}]   ;;  %s5037_s1 = inlined_call_operand.hbm [shape: bf16[1664,512], index: 1, kind: input, shape index: {}]   ;;  %s5038_s2 = inlined_call_operand.hbm [shape: f32[1,512], index: 2, kind: input, shape index: {}]   ;;  %s5039_s3 = inlined_call_operand.hbm [shape: bf16[512,128], index: 3, kind: input, shape index: {}]   ;;  %s5040_s4 = inlined_call_operand.hbm [shape: f32[1,128], index: 4, kind: input, shape index: {}]   ;;  %s5041_s5 = inlined_call_operand.hbm [shape: f32[8,128], index: 5, kind: output, shape index: {}]  }
   0x1   :  { %11 = vsyncpa [#allocation6], 0 }
   0x2   :  { %12 = vsyncpa [#allocation9], 0 }
   0x3   :  { %13 = vsyncpa [#allocation4], 0  ;;  %s4923_s18 = smov [#allocation5]   ;;  %s4783_s22 = scalar_lea.hbm %s5037_s1, 53248 }
   0x4   :  { %s29_s19 = sshll.u32 %s4923_s18, 4  ;;  %p4784_p0 = scmp.ne.s32.totalorder %s5037_s1, %s4783_s22  ;;  %s30_s19 = int_to_ptr.vmem [resolvable:$true] %s29_s19 }
   0x5   :  { %p4787_p1 = scmp.lt.u32.totalorder %s4783_s22, %s5037_s1 }
   0x7   :  { %p4789_p2 = pnand %p4787_p1, %p4784_p0 }
   0x9   :  { %4792 = shalt.err (!%p4789_p2)
}
   0xa   :  { %s4793_s27 = scalar_lea.vmem %s30_s19, 53248  ;;  %p4798_p4 = scmp.lt.s32.totalorder %s30_s19, %s30_s19 }
   0xb   :  { %p4794_p3 = scmp.ne.s32.totalorder %s30_s19, %s4793_s27  ;;  %p4799_p5 = scmp.lt.s32.totalorder %s4793_s27, %s4793_s27 }
   0xd   :  { %p4800_p6 = por %p4799_p5, %p4798_p4 }
   0xf   :  { %p4801_p7 = pnand %p4800_p6, %p4794_p3 }
  0x11   :  { %4804 = shalt.err (!%p4801_p7)
}
  0x12   :  { %s4924_s28 = smov 256   ;;  %s4925_s29 = smov 16  }
  0x13   :  { %35 = dma.hbm_to_vmem [thread:$0]  %s5037_s1, 53248, %s30_s19, [#allocation6], %s4924_s28, %s4924_s28, %s4925_s29  }
  0x14   :  { %s4926_s7 = smov [#allocation8]   ;;  %s4805_s11 = scalar_lea.hbm %s5039_s3, 4096 }
  0x15   :  { %s51_s8 = sshll.u32 %s4926_s7, 4  ;;  %p4806_p8 = scmp.ne.s32.totalorder %s5039_s3, %s4805_s11  ;;  %s52_s8 = int_to_ptr.vmem [resolvable:$true] %s51_s8 }
  0x16   :  { %p4809_p9 = scmp.lt.u32.totalorder %s4805_s11, %s5039_s3 }
  0x18   :  { %p4811_p10 = pnand %p4809_p9, %p4806_p8 }
  0x1a   :  { %4814 = shalt.err (!%p4811_p10)
}
  0x1b   :  { %s4815_s16 = scalar_lea.vmem %s52_s8, 4096  ;;  %p4820_p12 = scmp.lt.s32.totalorder %s52_s8, %s52_s8 }
  0x1c   :  { %p4816_p11 = scmp.ne.s32.totalorder %s52_s8, %s4815_s16  ;;  %p4821_p13 = scmp.lt.s32.totalorder %s4815_s16, %s4815_s16 }
  0x1e   :  { %p4822_p0 = por %p4821_p13, %p4820_p12 }
  0x20   :  { %p4823_p1 = pnand %p4822_p0, %p4816_p11 }
  0x22   :  { %4826 = shalt.err (!%p4823_p1)
}
  0x23   :  { %s4927_s1 = smov 64   ;;  %s4928_s17 = smov 4  }
  0x24   :  { %57 = dma.hbm_to_vmem [thread:$0]  %s5039_s3, 4096, %s52_s8, [#allocation9], %s4927_s1, %s4927_s1, %s4928_s17  }
  0x25   :  { %s4929_s20 = smov [#allocation2]   ;;  %s4930_s22 = smov [#allocation7]  }
  0x26   :  { %s20_s21 = sshll.u32 %s4929_s20, 4  ;;  %s42_s23 = sshll.u32 %s4930_s22, 4  ;;  %s21_s21 = int_to_ptr.vmem [resolvable:$true] %s20_s21  ;;  %s43_s23 = int_to_ptr.vmem [resolvable:$true] %s42_s23 }
  0x27   :  { %s4827_s26 = scalar_lea.hbm %s5036_s0, 1664 }
  0x28   :  { %p4828_p2 = scmp.ne.s32.totalorder %s5036_s0, %s4827_s26  ;;  %p4831_p3 = scmp.lt.u32.totalorder %s4827_s26, %s5036_s0 }
  0x2a   :  { %p4833_p4 = pnand %p4831_p3, %p4828_p2 }
  0x2c   :  { %4836 = shalt.err (!%p4833_p4)
}
  0x2d   :  { %s4837_s3 = scalar_lea.vmem %s21_s21, 1664  ;;  %p4842_p6 = scmp.lt.s32.totalorder %s21_s21, %s21_s21 }
  0x2e   :  { %p4838_p5 = scmp.ne.s32.totalorder %s21_s21, %s4837_s3  ;;  %p4843_p7 = scmp.lt.s32.totalorder %s4837_s3, %s4837_s3 }
  0x30   :  { %p4844_p8 = por %p4843_p7, %p4842_p6 }
  0x32   :  { %p4845_p9 = pnand %p4844_p8, %p4838_p5 }
  0x34   :  { %4848 = shalt.err (!%p4845_p9)
}
  0x35   :  { %23 = dma.hbm_to_vmem [thread:$0]  %s5036_s0, 1664, %s21_s21, [#allocation3]  }
  0x36   :  { %s4849_s10 = scalar_lea.hbm %s5038_s2, 64 }
  0x37   :  { %p4850_p10 = scmp.ne.s32.totalorder %s5038_s2, %s4849_s10  ;;  %p4853_p11 = scmp.lt.u32.totalorder %s4849_s10, %s5038_s2 }
  0x39   :  { %p4855_p12 = pnand %p4853_p11, %p4850_p10 }
  0x3b   :  { %4858 = shalt.err (!%p4855_p12)
}
  0x3c   :  { %s4859_s15 = scalar_lea.vmem %s43_s23, 64  ;;  %p4864_p0 = scmp.lt.s32.totalorder %s43_s23, %s43_s23 }
  0x3d   :  { %p4860_p13 = scmp.ne.s32.totalorder %s43_s23, %s4859_s15  ;;  %p4865_p1 = scmp.lt.s32.totalorder %s4859_s15, %s4859_s15 }
  0x3f   :  { %p4866_p2 = por %p4865_p1, %p4864_p0 }
  0x41   :  { %p4867_p3 = pnand %p4866_p2, %p4860_p13 }
  0x43   :  { %4870 = shalt.err (!%p4867_p3)
}
  0x44   :  { %45 = dma.hbm_to_vmem [thread:$0]  %s5038_s2, 64, %s43_s23, [#allocation6]  }
  0x45   :  { %s4931_s1 = smov [#allocation10]   ;;  %s4871_s20 = scalar_lea.hbm %s5040_s4, 16 }
  0x46   :  { %s64_s17 = sshll.u32 %s4931_s1, 4  ;;  %p4872_p4 = scmp.ne.s32.totalorder %s5040_s4, %s4871_s20  ;;  %s65_s17 = int_to_ptr.vmem [resolvable:$true] %s64_s17 }
  0x47   :  { %p4875_p5 = scmp.lt.u32.totalorder %s4871_s20, %s5040_s4 }
  0x49   :  { %p4877_p6 = pnand %p4875_p5, %p4872_p4 }
  0x4b   :  { %4880 = shalt.err (!%p4877_p6)
}
  0x4c   :  { %s4881_s26 = scalar_lea.vmem %s65_s17, 16  ;;  %s4885_s2 = scalar_lea.vmem %s65_s17, 32 }
  0x4d   :  { %p4882_p7 = scmp.ne.s32.totalorder %s65_s17, %s4881_s26  ;;  %p4886_p8 = scmp.lt.s32.totalorder %s65_s17, %s65_s17 }
  0x4e   :  { %p4887_p9 = scmp.lt.s32.totalorder %s4885_s2, %s4881_s26 }
  0x50   :  { %p4888_p10 = por %p4887_p9, %p4886_p8 }
  0x52   :  { %p4889_p11 = pnand %p4888_p10, %p4882_p7 }
  0x54   :  { %4892 = shalt.err (!%p4889_p11)
}
  0x55   :  { %67 = dma.hbm_to_vmem [thread:$0]  %s5040_s4, 16, %s65_s17, [#allocation9]  }
  0x56   :  { %4915 = dma.done.wait [#allocation3], 1664  }
  0x57   :  { %4916 = vsyncadd [#allocation3], 4294965632 }
  0x58   :  { %4917 = dma.done.wait [#allocation6], 53312  }
  0x59   :  { %4918 = vsyncadd [#allocation6], 4294913984 }
  0x5a   :  { %4919 = dma.done.wait [#allocation9], 4112  }
  0x5b   :  { %4920 = vsyncadd [#allocation9], 4294963184  ;;  %v4127_v0 = vld [vmem:[#allocation5 + $0x4] ss:$16 sps:$4 sm:$0xff]   ;;  %v4129_v1 = vld [vmem:[#allocation5 + $0xc] ss:$16 sps:$4 sm:$0xff]  }
  0x5c   :  { %2628 = vmatprep.subr.bf16.mxu0 %v4127_v0  ;;  %v4131_v2 = vld [vmem:[#allocation5] ss:$16 sps:$4 sm:$0xff]   ;;  %v4132_v3 = vld [vmem:[#allocation5 + $0x8] ss:$16 sps:$4 sm:$0xff]   ;;  %2915 = vmatprep.subr.bf16.mxu1 %v4129_v1  ;;  %v4133_v4 = vld [vmem:[#allocation5 + $0x24] ss:$16 sps:$4 sm:$0xff]  }
  0x5d   :  { %2629 = vmatpush1.bf16.msra.mxu0 %v4131_v2  ;;  %2916 = vmatpush1.bf16.msra.mxu1 %v4132_v3  ;;  %v4135_v5 = vld [vmem:[#allocation5 + $0x2c] ss:$16 sps:$4 sm:$0xff]   ;;  %v4137_v6 = vld [vmem:[#allocation5 + $0x20] ss:$16 sps:$4 sm:$0xff]   ;;  %v4138_v7 = vld [vmem:[#allocation5 + $0x28] ss:$16 sps:$4 sm:$0xff]  }
  0x5e   :  { %2630 = vmatprep.subr.bf16.mxu0 %v4133_v4  ;;  %2917 = vmatprep.subr.bf16.mxu1 %v4135_v5  ;;  %v4139_v8 = vld [vmem:[#allocation5 + $0x44] ss:$16 sps:$4 sm:$0xff]   ;;  %v4141_v9 = vld [vmem:[#allocation5 + $0x4c] ss:$16 sps:$4 sm:$0xff]   ;;  %v4143_v10 = vld [vmem:[#allocation5 + $0x40] ss:$16 sps:$4 sm:$0xff]  }
  0x5f   :  { %v4144_v11 = vld [vmem:[#allocation5 + $0x48] ss:$16 sps:$4 sm:$0xff]   ;;  %v4145_v12 = vld [vmem:[#allocation5 + $0x64] ss:$16 sps:$4 sm:$0xff]   ;;  %v4147_v13 = vld [vmem:[#allocation5 + $0x6c] ss:$16 sps:$4 sm:$0xff]  }
  0x60   :  { %v4149_v14 = vld [vmem:[#allocation5 + $0x60] ss:$16 sps:$4 sm:$0xff]   ;;  %v4150_v15 = vld [vmem:[#allocation5 + $0x68] ss:$16 sps:$4 sm:$0xff]   ;;  %v4151_v16 = vld [vmem:[#allocation5 + $0x84] ss:$16 sps:$4 sm:$0xff]  }
  0x61   :  { %2631 = vmatpush1.bf16.msra.mxu0 %v4137_v6  ;;  %2918 = vmatpush1.bf16.msra.mxu1 %v4138_v7  ;;  %v4153_v17 = vld [vmem:[#allocation5 + $0x8c] ss:$16 sps:$4 sm:$0xff]   ;;  %v4155_v18 = vld [vmem:[#allocation5 + $0x80] ss:$16 sps:$4 sm:$0xff]   ;;  %v4156_v19 = vld [vmem:[#allocation5 + $0x88] ss:$16 sps:$4 sm:$0xff]  }
  0x62   :  { %2632 = vmatprep.subr.bf16.mxu0 %v4139_v8  ;;  %2919 = vmatprep.subr.bf16.mxu1 %v4141_v9  ;;  %v4157_v20 = vld [vmem:[#allocation5 + $0xa4] ss:$16 sps:$4 sm:$0xff]   ;;  %v4159_v21 = vld [vmem:[#allocation5 + $0xac] ss:$16 sps:$4 sm:$0xff]   ;;  %v4161_v22 = vld [vmem:[#allocation5 + $0xa0] ss:$16 sps:$4 sm:$0xff]  }
  0x63   :  { %v4162_v23 = vld [vmem:[#allocation5 + $0xa8] ss:$16 sps:$4 sm:$0xff]   ;;  %v4163_v24 = vld [vmem:[#allocation5 + $0xc4] ss:$16 sps:$4 sm:$0xff]   ;;  %v4165_v25 = vld [vmem:[#allocation5 + $0xcc] ss:$16 sps:$4 sm:$0xff]  }
  0x64   :  { %v4167_v26 = vld [vmem:[#allocation5 + $0xc0] ss:$16 sps:$4 sm:$0xff]   ;;  %v4168_v27 = vld [vmem:[#allocation5 + $0xc8] ss:$16 sps:$4 sm:$0xff]   ;;  %v4169_v28 = vld [vmem:[#allocation5 + $0xe4] ss:$16 sps:$4 sm:$0xff]  }
  0x65   :  { %2633 = vmatpush1.bf16.msra.mxu0 %v4143_v10  ;;  %2920 = vmatpush1.bf16.msra.mxu1 %v4144_v11  ;;  %v4171_v29 = vld [vmem:[#allocation5 + $0xec] ss:$16 sps:$4 sm:$0xff]   ;;  %v4173_v30 = vld [vmem:[#allocation5 + $0xe0] ss:$16 sps:$4 sm:$0xff]   ;;  %v4174_v31 = vld [vmem:[#allocation5 + $0xe8] ss:$16 sps:$4 sm:$0xff]  }
  0x66   :  { %2634 = vmatprep.subr.bf16.mxu0 %v4145_v12  ;;  %2921 = vmatprep.subr.bf16.mxu1 %v4147_v13  ;;  %v4175_v32 = vld [vmem:[#allocation5 + $0x104] ss:$16 sps:$4 sm:$0xff]   ;;  %v4177_v33 = vld [vmem:[#allocation5 + $0x10c] ss:$16 sps:$4 sm:$0xff]   ;;  %v4179_v34 = vld [vmem:[#allocation5 + $0x100] ss:$16 sps:$4 sm:$0xff]  }
  0x67   :  { %v4180_v35 = vld [vmem:[#allocation5 + $0x108] ss:$16 sps:$4 sm:$0xff]   ;;  %v4181_v36 = vld [vmem:[#allocation5 + $0x124] ss:$16 sps:$4 sm:$0xff]   ;;  %v4183_v37 = vld [vmem:[#allocation5 + $0x12c] ss:$16 sps:$4 sm:$0xff]  }
  0x68   :  { %v4185_v38 = vld [vmem:[#allocation5 + $0x120] ss:$16 sps:$4 sm:$0xff]   ;;  %v4186_v39 = vld [vmem:[#allocation5 + $0x128] ss:$16 sps:$4 sm:$0xff]   ;;  %v4187_v40 = vld [vmem:[#allocation5 + $0x144] ss:$16 sps:$4 sm:$0xff]  }
  0x69   :  { %2635 = vmatpush1.bf16.msra.mxu0 %v4149_v14  ;;  %2922 = vmatpush1.bf16.msra.mxu1 %v4150_v15  ;;  %v4189_v41 = vld [vmem:[#allocation5 + $0x14c] ss:$16 sps:$4 sm:$0xff]   ;;  %v4191_v42 = vld [vmem:[#allocation5 + $0x140] ss:$16 sps:$4 sm:$0xff]   ;;  %v4192_v43 = vld [vmem:[#allocation5 + $0x148] ss:$16 sps:$4 sm:$0xff]  }
  0x6a   :  { %2636 = vmatprep.subr.bf16.mxu0 %v4151_v16  ;;  %2923 = vmatprep.subr.bf16.mxu1 %v4153_v17  ;;  %v4193_v44 = vld [vmem:[#allocation5 + $0x164] ss:$16 sps:$4 sm:$0xff]   ;;  %v4195_v45 = vld [vmem:[#allocation5 + $0x16c] ss:$16 sps:$4 sm:$0xff]   ;;  %v4197_v47 = vld [vmem:[#allocation5 + $0x160] ss:$16 sps:$4 sm:$0xff]  }
  0x6b   :  { %v85_v46 = vld [vmem:[#allocation2 + $0x8] sm:$0xff]  ;;  %v4198_v49 = vld [vmem:[#allocation5 + $0x168] ss:$16 sps:$4 sm:$0xff]   ;;  %v4201_v51 = vld [vmem:[#allocation5 + $0x18c] ss:$16 sps:$4 sm:$0xff]   ;;  %s4933_s4 = smov [#allocation11]  }
  0x6c   :  { %v98_v48 = vpack.c.bf16 %v85_v46, %v85_v46  ;;  %v4199_v50 = vld [vmem:[#allocation5 + $0x184] ss:$16 sps:$4 sm:$0xff]   ;;  %v4203_v52 = vld [vmem:[#allocation5 + $0x180] ss:$16 sps:$4 sm:$0xff]   ;;  %v4204_v53 = vld [vmem:[#allocation5 + $0x188] ss:$16 sps:$4 sm:$0xff]  }
  0x6d   :  { %2637 = vmatpush1.bf16.msra.mxu0 %v4155_v18  ;;  %2924 = vmatpush1.bf16.msra.mxu1 %v4156_v19  ;;  %v4205_v54 = vld [vmem:[#allocation5 + $0x1a4] ss:$16 sps:$4 sm:$0xff]   ;;  %v4207_v55 = vld [vmem:[#allocation5 + $0x1ac] ss:$16 sps:$4 sm:$0xff]   ;;  %v4209_v56 = vld [vmem:[#allocation5 + $0x1a0] ss:$16 sps:$4 sm:$0xff]  }
  0x6e   :  { %2638 = vmatprep.subr.bf16.mxu0 %v4157_v20  ;;  %2925 = vmatprep.subr.bf16.mxu1 %v4159_v21  ;;  %v4210_v57 = vld [vmem:[#allocation5 + $0x1a8] ss:$16 sps:$4 sm:$0xff]   ;;  %v4211_v58 = vld [vmem:[#allocation5 + $0x1c4] ss:$16 sps:$4 sm:$0xff]   ;;  %v4213_v59 = vld [vmem:[#allocation5 + $0x1cc] ss:$16 sps:$4 sm:$0xff]  }
  0x6f   :  { %2660 = vmatprep.mubr.bf16.mxu0 %v98_v48  ;;  %2947 = vmatprep.mubr.bf16.mxu1 %v98_v48  ;;  %v4215_v60 = vld [vmem:[#allocation5 + $0x1c0] ss:$16 sps:$4 sm:$0xff]   ;;  %v4216_v61 = vld [vmem:[#allocation5 + $0x1c8] ss:$16 sps:$4 sm:$0xff]   ;;  %v4217_v62 = vld [vmem:[#allocation5 + $0x1e4] ss:$16 sps:$4 sm:$0xff]  }
  0x70   :  { %v4219_v63 = vld [vmem:[#allocation5 + $0x1ec] ss:$16 sps:$4 sm:$0xff]   ;;  %v4221_v0 = vld [vmem:[#allocation5 + $0x1e0] ss:$16 sps:$4 sm:$0xff]   ;;  %v4222_v1 = vld [vmem:[#allocation5 + $0x1e8] ss:$16 sps:$4 sm:$0xff]  }
  0x71   :  { %2639 = vmatpush1.bf16.msra.mxu0 %v4161_v22  ;;  %2926 = vmatpush1.bf16.msra.mxu1 %v4162_v23  ;;  %v84_v2 = vld [vmem:[#allocation2] sm:$0xff]  ;;  %v4225_v3 = vld [vmem:[#allocation5 + $0x204] ss:$16 sps:$4 sm:$0xff]   ;;  %v4223_v6 = vld [vmem:[#allocation5 + $0x200] ss:$16 sps:$4 sm:$0xff]   ;;  %s3560_s28 = sshll.u32 %s4933_s4, 4  ;;  %s3561_s28 = int_to_ptr.vmem [resolvable:$true] %s3560_s28 }
  0x72   :  { %2640 = vmatprep.subr.bf16.mxu0 %v4163_v24  ;;  %2927 = vmatprep.subr.bf16.mxu1 %v4165_v25  ;;  %v4228_v4 = vld [vmem:[#allocation5 + $0x20c] ss:$16 sps:$4 sm:$0xff]   ;;  %v97_v5 = vpack.c.bf16 %v84_v2, %v84_v2  ;;  %v4226_v7 = vld [vmem:[#allocation5 + $0x208] ss:$16 sps:$4 sm:$0xff]   ;;  %v4231_v8 = vld [vmem:[#allocation5 + $0x224] ss:$16 sps:$4 sm:$0xff]   ;;  %p4898_p13 = scmp.lt.s32.totalorder %s3561_s28, %s3561_s28 }
  0x73   :  { %v4234_v9 = vld [vmem:[#allocation5 + $0x22c] ss:$16 sps:$4 sm:$0xff]   ;;  %v4229_v10 = vld [vmem:[#allocation5 + $0x220] ss:$16 sps:$4 sm:$0xff]   ;;  %v4232_v11 = vld [vmem:[#allocation5 + $0x228] ss:$16 sps:$4 sm:$0xff]  }
  0x74   :  { %v4237_v12 = vld [vmem:[#allocation5 + $0x244] ss:$16 sps:$4 sm:$0xff]   ;;  %v4240_v13 = vld [vmem:[#allocation5 + $0x24c] ss:$16 sps:$4 sm:$0xff]   ;;  %v4235_v14 = vld [vmem:[#allocation5 + $0x240] ss:$16 sps:$4 sm:$0xff]  }
  0x75   :  { %2641 = vmatpush1.bf16.msra.mxu0 %v4167_v26  ;;  %2928 = vmatpush1.bf16.msra.mxu1 %v4168_v27  ;;  %v4238_v15 = vld [vmem:[#allocation5 + $0x248] ss:$16 sps:$4 sm:$0xff]   ;;  %v4243_v16 = vld [vmem:[#allocation5 + $0x264] ss:$16 sps:$4 sm:$0xff]   ;;  %v4246_v17 = vld [vmem:[#allocation5 + $0x26c] ss:$16 sps:$4 sm:$0xff]  }
  0x76   :  { %2642 = vmatprep.subr.bf16.mxu0 %v4169_v28  ;;  %2929 = vmatprep.subr.bf16.mxu1 %v4171_v29  ;;  %v4241_v18 = vld [vmem:[#allocation5 + $0x260] ss:$16 sps:$4 sm:$0xff]   ;;  %v4244_v19 = vld [vmem:[#allocation5 + $0x268] ss:$16 sps:$4 sm:$0xff]   ;;  %v4249_v20 = vld [vmem:[#allocation5 + $0x284] ss:$16 sps:$4 sm:$0xff]  }
  0x77   :  { %v4252_v21 = vld [vmem:[#allocation5 + $0x28c] ss:$16 sps:$4 sm:$0xff]   ;;  %v4247_v22 = vld [vmem:[#allocation5 + $0x280] ss:$16 sps:$4 sm:$0xff]   ;;  %v4250_v23 = vld [vmem:[#allocation5 + $0x288] ss:$16 sps:$4 sm:$0xff]  }
  0x78   :  { %v4255_v24 = vld [vmem:[#allocation5 + $0x2a4] ss:$16 sps:$4 sm:$0xff]   ;;  %v4258_v25 = vld [vmem:[#allocation5 + $0x2ac] ss:$16 sps:$4 sm:$0xff]   ;;  %v4253_v26 = vld [vmem:[#allocation5 + $0x2a0] ss:$16 sps:$4 sm:$0xff]  }
  0x79   :  { %2643 = vmatpush1.bf16.msra.mxu0 %v4173_v30  ;;  %2930 = vmatpush1.bf16.msra.mxu1 %v4174_v31  ;;  %v4256_v27 = vld [vmem:[#allocation5 + $0x2a8] ss:$16 sps:$4 sm:$0xff]   ;;  %v4261_v28 = vld [vmem:[#allocation5 + $0x2c4] ss:$16 sps:$4 sm:$0xff]   ;;  %v4264_v29 = vld [vmem:[#allocation5 + $0x2cc] ss:$16 sps:$4 sm:$0xff]  }
  0x7a   :  { %2644 = vmatprep.subr.bf16.mxu0 %v4175_v32  ;;  %2931 = vmatprep.subr.bf16.mxu1 %v4177_v33  ;;  %v87_v30 = vld [vmem:[#allocation2 + $0x18] sm:$0xff]  ;;  %v4262_v33 = vld [vmem:[#allocation5 + $0x2c8] ss:$16 sps:$4 sm:$0xff]   ;;  %s4893_s29 = scalar_lea.vmem %s3561_s28, 128 }
  0x7b   :  { %v4259_v31 = vld [vmem:[#allocation5 + $0x2c0] ss:$16 sps:$4 sm:$0xff]   ;;  %v100_v32 = vpack.c.bf16 %v87_v30, %v87_v30  ;;  %v4285_v46 = vld [vmem:[#allocation5 + $0x344] ss:$16 sps:$4 sm:$0xff]   ;;  %p4894_p12 = scmp.ne.s32.totalorder %s3561_s28, %s4893_s29  ;;  %p4899_p0 = scmp.lt.s32.totalorder %s4893_s29, %s4893_s29 }
  0x7c   :  { %v4283_v48 = vld [vmem:[#allocation5 + $0x340] ss:$16 sps:$4 sm:$0xff]   ;;  %v4315_v2 = vld [vmem:[#allocation5 + $0x3e4] ss:$16 sps:$4 sm:$0xff]  }
  0x7d   :  { %2645 = vmatpush1.bf16.msra.mxu0 %v4179_v34  ;;  %2932 = vmatpush1.bf16.msra.mxu1 %v4180_v35  ;;  %v4267_v34 = vld [vmem:[#allocation5 + $0x2e4] ss:$16 sps:$4 sm:$0xff]   ;;  %v4270_v35 = vld [vmem:[#allocation5 + $0x2ec] ss:$16 sps:$4 sm:$0xff]   ;;  %p4900_p1 = por %p4899_p0, %p4898_p13 }
  0x7e   :  { %2646 = vmatprep.subr.bf16.mxu0 %v4181_v36  ;;  %2933 = vmatprep.subr.bf16.mxu1 %v4183_v37  ;;  %v4265_v36 = vld [vmem:[#allocation5 + $0x2e0] ss:$16 sps:$4 sm:$0xff]   ;;  %v4268_v37 = vld [vmem:[#allocation5 + $0x2e8] ss:$16 sps:$4 sm:$0xff]   ;;  %v4351_v30 = vld [vmem:[#allocation5 + $0x4a4] ss:$16 sps:$4 sm:$0xff]  }
  0x7f   :  { %p4901_p2 = pnand %p4900_p1, %p4894_p12 }
  0x81   :  { %2647 = vmatpush1.bf16.msra.mxu0 %v4185_v38  ;;  %2934 = vmatpush1.bf16.msra.mxu1 %v4186_v39  ;;  %v4273_v38 = vld [vmem:[#allocation5 + $0x304] ss:$16 sps:$4 sm:$0xff]   ;;  %v4276_v39 = vld [vmem:[#allocation5 + $0x30c] ss:$16 sps:$4 sm:$0xff]  }
  0x82   :  { %2648 = vmatprep.subr.bf16.mxu0 %v4187_v40  ;;  %2935 = vmatprep.subr.bf16.mxu1 %v4189_v41  ;;  %v4271_v40 = vld [vmem:[#allocation5 + $0x300] ss:$16 sps:$4 sm:$0xff]   ;;  %v4274_v41 = vld [vmem:[#allocation5 + $0x308] ss:$16 sps:$4 sm:$0xff]  }
  0x85   :  { %2649 = vmatpush1.bf16.msra.mxu0 %v4191_v42  ;;  %2936 = vmatpush1.bf16.msra.mxu1 %v4192_v43  ;;  %v4279_v42 = vld [vmem:[#allocation5 + $0x324] ss:$16 sps:$4 sm:$0xff]   ;;  %v4282_v43 = vld [vmem:[#allocation5 + $0x32c] ss:$16 sps:$4 sm:$0xff]  }
  0x86   :  { %2650 = vmatprep.subr.bf16.mxu0 %v4193_v44  ;;  %2937 = vmatprep.subr.bf16.mxu1 %v4195_v45  ;;  %v4277_v44 = vld [vmem:[#allocation5 + $0x320] ss:$16 sps:$4 sm:$0xff]   ;;  %v4280_v45 = vld [vmem:[#allocation5 + $0x328] ss:$16 sps:$4 sm:$0xff]  }
  0x89   :  { %2651 = vmatpush1.bf16.msra.mxu0 %v4197_v47  ;;  %2938 = vmatpush1.bf16.msra.mxu1 %v4198_v49  ;;  %v4288_v47 = vld [vmem:[#allocation5 + $0x34c] ss:$16 sps:$4 sm:$0xff]   ;;  %v4286_v49 = vld [vmem:[#allocation5 + $0x348] ss:$16 sps:$4 sm:$0xff]  }
  0x8a   :  { %2652 = vmatprep.subr.bf16.mxu0 %v4199_v50  ;;  %2939 = vmatprep.subr.bf16.mxu1 %v4201_v51  ;;  %v4291_v50 = vld [vmem:[#allocation5 + $0x364] ss:$16 sps:$4 sm:$0xff]   ;;  %v4294_v51 = vld [vmem:[#allocation5 + $0x36c] ss:$16 sps:$4 sm:$0xff]  }
  0x8d   :  { %2653 = vmatpush1.bf16.msra.mxu0 %v4203_v52  ;;  %2940 = vmatpush1.bf16.msra.mxu1 %v4204_v53  ;;  %v4289_v52 = vld [vmem:[#allocation5 + $0x360] ss:$16 sps:$4 sm:$0xff]   ;;  %v4292_v53 = vld [vmem:[#allocation5 + $0x368] ss:$16 sps:$4 sm:$0xff]  }
  0x8e   :  { %2654 = vmatprep.subr.bf16.mxu0 %v4205_v54  ;;  %2941 = vmatprep.subr.bf16.mxu1 %v4207_v55  ;;  %v4297_v54 = vld [vmem:[#allocation5 + $0x384] ss:$16 sps:$4 sm:$0xff]   ;;  %v4300_v55 = vld [vmem:[#allocation5 + $0x38c] ss:$16 sps:$4 sm:$0xff]  }
  0x91   :  { %2655 = vmatpush1.bf16.msra.mxu0 %v4209_v56  ;;  %2942 = vmatpush1.bf16.msra.mxu1 %v4210_v57  ;;  %v4295_v56 = vld [vmem:[#allocation5 + $0x380] ss:$16 sps:$4 sm:$0xff]   ;;  %v4298_v57 = vld [vmem:[#allocation5 + $0x388] ss:$16 sps:$4 sm:$0xff]  }
  0x92   :  { %2656 = vmatprep.subr.bf16.mxu0 %v4211_v58  ;;  %2943 = vmatprep.subr.bf16.mxu1 %v4213_v59  ;;  %v4303_v58 = vld [vmem:[#allocation5 + $0x3a4] ss:$16 sps:$4 sm:$0xff]   ;;  %v4306_v59 = vld [vmem:[#allocation5 + $0x3ac] ss:$16 sps:$4 sm:$0xff]  }
  0x95   :  { %2657 = vmatpush1.bf16.msra.mxu0 %v4215_v60  ;;  %2944 = vmatpush1.bf16.msra.mxu1 %v4216_v61  ;;  %v4301_v60 = vld [vmem:[#allocation5 + $0x3a0] ss:$16 sps:$4 sm:$0xff]   ;;  %v4304_v61 = vld [vmem:[#allocation5 + $0x3a8] ss:$16 sps:$4 sm:$0xff]  }
  0x96   :  { %2658 = vmatprep.subr.bf16.mxu0 %v4217_v62  ;;  %2945 = vmatprep.subr.bf16.mxu1 %v4219_v63  ;;  %v4309_v62 = vld [vmem:[#allocation5 + $0x3c4] ss:$16 sps:$4 sm:$0xff]   ;;  %v4312_v63 = vld [vmem:[#allocation5 + $0x3cc] ss:$16 sps:$4 sm:$0xff]  }
  0x99   :  { %2659 = vmatpush1.bf16.msra.mxu0 %v4221_v0  ;;  %2946 = vmatpush1.bf16.msra.mxu1 %v4222_v1  ;;  %v4307_v0 = vld [vmem:[#allocation5 + $0x3c0] ss:$16 sps:$4 sm:$0xff]   ;;  %v4310_v1 = vld [vmem:[#allocation5 + $0x3c8] ss:$16 sps:$4 sm:$0xff]  }
  0x9a   :  { %2669 = vmatprep.subr.bf16.mxu0 %v4225_v3  ;;  %2956 = vmatprep.subr.bf16.mxu1 %v4228_v4  ;;  %v4318_v3 = vld [vmem:[#allocation5 + $0x3ec] ss:$16 sps:$4 sm:$0xff]   ;;  %v4313_v4 = vld [vmem:[#allocation5 + $0x3e0] ss:$16 sps:$4 sm:$0xff]  }
  0x9c   :  { %2661 = vmatmul.mubr.bf16.vlgmr.msra.gmra.mrb[0].mxu0 %v97_v5  ;;  %2948 = vmatmul.mubr.bf16.vlgmr.msra.gmra.mrb[0].mxu1 %v97_v5  ;;  %v4316_v5 = vld [vmem:[#allocation5 + $0x3e8] ss:$16 sps:$4 sm:$0xff]  }
  0x9d   :  { %2670 = vmatpush1.bf16.msra.mxu0 %v4223_v6  ;;  %2957 = vmatpush1.bf16.msra.mxu1 %v4226_v7  ;;  %v4321_v6 = vld [vmem:[#allocation5 + $0x404] ss:$16 sps:$4 sm:$0xff]   ;;  %v86_v7 = vld [vmem:[#allocation2 + $0x10] sm:$0xff] }
  0x9e   :  { %2671 = vmatprep.subr.bf16.mxu0 %v4231_v8  ;;  %2958 = vmatprep.subr.bf16.mxu1 %v4234_v9  ;;  %v4324_v8 = vld [vmem:[#allocation5 + $0x40c] ss:$16 sps:$4 sm:$0xff]   ;;  %v4319_v9 = vld [vmem:[#allocation5 + $0x400] ss:$16 sps:$4 sm:$0xff]  }
  0x9f   :  { %2701 = vmatprep.mubr.bf16.mxu0 %v100_v32  ;;  %2988 = vmatprep.mubr.bf16.mxu1 %v100_v32  ;;  %v4349_v32 = vld [vmem:[#allocation5 + $0x4a0] ss:$16 sps:$4 sm:$0xff]  }
  0xa1   :  { %2672 = vmatpush1.bf16.msra.mxu0 %v4229_v10  ;;  %2959 = vmatpush1.bf16.msra.mxu1 %v4232_v11  ;;  %v4322_v10 = vld [vmem:[#allocation5 + $0x408] ss:$16 sps:$4 sm:$0xff]   ;;  %v99_v11 = vpack.c.bf16 %v86_v7, %v86_v7  ;;  %v4414_v7 = vld [vmem:[#allocation5 + $0x5ec] ss:$16 sps:$4 sm:$0xff]  }
  0xa2   :  { %2673 = vmatprep.subr.bf16.mxu0 %v4237_v12  ;;  %2960 = vmatprep.subr.bf16.mxu1 %v4240_v13  ;;  %v4327_v12 = vld [vmem:[#allocation5 + $0x424] ss:$16 sps:$4 sm:$0xff]   ;;  %v4330_v13 = vld [vmem:[#allocation5 + $0x42c] ss:$16 sps:$4 sm:$0xff]  }
  0xa5   :  { %2674 = vmatpush1.bf16.msra.mxu0 %v4235_v14  ;;  %2961 = vmatpush1.bf16.msra.mxu1 %v4238_v15  ;;  %v89_v14 = vld [vmem:[#allocation2 + $0x28] sm:$0xff] }
  0xa6   :  { %2675 = vmatprep.subr.bf16.mxu0 %v4243_v16  ;;  %2962 = vmatprep.subr.bf16.mxu1 %v4246_v17  ;;  %v102_v15 = vpack.c.bf16 %v89_v14, %v89_v14  ;;  %v4325_v16 = vld [vmem:[#allocation5 + $0x420] ss:$16 sps:$4 sm:$0xff]   ;;  %v4328_v17 = vld [vmem:[#allocation5 + $0x428] ss:$16 sps:$4 sm:$0xff]  }
  0xa7   :  { %v4418_v14 = vld [vmem:[#allocation5 + $0x608] ss:$16 sps:$4 sm:$0xff]  }
  0xa9   :  { %2676 = vmatpush1.bf16.msra.mxu0 %v4241_v18  ;;  %2963 = vmatpush1.bf16.msra.mxu1 %v4244_v19  ;;  %v4333_v18 = vld [vmem:[#allocation5 + $0x444] ss:$16 sps:$4 sm:$0xff]   ;;  %v4336_v19 = vld [vmem:[#allocation5 + $0x44c] ss:$16 sps:$4 sm:$0xff]  }
  0xaa   :  { %2677 = vmatprep.subr.bf16.mxu0 %v4249_v20  ;;  %2964 = vmatprep.subr.bf16.mxu1 %v4252_v21  ;;  %v4331_v20 = vld [vmem:[#allocation5 + $0x440] ss:$16 sps:$4 sm:$0xff]   ;;  %v4334_v21 = vld [vmem:[#allocation5 + $0x448] ss:$16 sps:$4 sm:$0xff]  }
  0xad   :  { %2678 = vmatpush1.bf16.msra.mxu0 %v4247_v22  ;;  %2965 = vmatpush1.bf16.msra.mxu1 %v4250_v23  ;;  %v4339_v22 = vld [vmem:[#allocation5 + $0x464] ss:$16 sps:$4 sm:$0xff]   ;;  %v4342_v23 = vld [vmem:[#allocation5 + $0x46c] ss:$16 sps:$4 sm:$0xff]  }
  0xae   :  { %2679 = vmatprep.subr.bf16.mxu0 %v4255_v24  ;;  %2966 = vmatprep.subr.bf16.mxu1 %v4258_v25  ;;  %v4337_v24 = vld [vmem:[#allocation5 + $0x460] ss:$16 sps:$4 sm:$0xff]   ;;  %v4340_v25 = vld [vmem:[#allocation5 + $0x468] ss:$16 sps:$4 sm:$0xff]  }
  0xb1   :  { %2680 = vmatpush1.bf16.msra.mxu0 %v4253_v26  ;;  %2967 = vmatpush1.bf16.msra.mxu1 %v4256_v27  ;;  %v4345_v26 = vld [vmem:[#allocation5 + $0x484] ss:$16 sps:$4 sm:$0xff]   ;;  %v4348_v27 = vld [vmem:[#allocation5 + $0x48c] ss:$16 sps:$4 sm:$0xff]  }
  0xb2   :  { %2681 = vmatprep.subr.bf16.mxu0 %v4261_v28  ;;  %2968 = vmatprep.subr.bf16.mxu1 %v4264_v29  ;;  %v4343_v28 = vld [vmem:[#allocation5 + $0x480] ss:$16 sps:$4 sm:$0xff]   ;;  %v4346_v29 = vld [vmem:[#allocation5 + $0x488] ss:$16 sps:$4 sm:$0xff]  }
  0xb5   :  { %2682 = vmatpush1.bf16.msra.mxu0 %v4259_v31  ;;  %2969 = vmatpush1.bf16.msra.mxu1 %v4262_v33  ;;  %v4354_v31 = vld [vmem:[#allocation5 + $0x4ac] ss:$16 sps:$4 sm:$0xff]   ;;  %v4352_v33 = vld [vmem:[#allocation5 + $0x4a8] ss:$16 sps:$4 sm:$0xff]  }
  0xb6   :  { %2683 = vmatprep.subr.bf16.mxu0 %v4267_v34  ;;  %2970 = vmatprep.subr.bf16.mxu1 %v4270_v35  ;;  %v4357_v34 = vld [vmem:[#allocation5 + $0x4c4] ss:$16 sps:$4 sm:$0xff]   ;;  %v4360_v35 = vld [vmem:[#allocation5 + $0x4cc] ss:$16 sps:$4 sm:$0xff]  }
  0xb9   :  { %2684 = vmatpush1.bf16.msra.mxu0 %v4265_v36  ;;  %2971 = vmatpush1.bf16.msra.mxu1 %v4268_v37  ;;  %v4355_v36 = vld [vmem:[#allocation5 + $0x4c0] ss:$16 sps:$4 sm:$0xff]   ;;  %v4358_v37 = vld [vmem:[#allocation5 + $0x4c8] ss:$16 sps:$4 sm:$0xff]  }
  0xba   :  { %2685 = vmatprep.subr.bf16.mxu0 %v4273_v38  ;;  %2972 = vmatprep.subr.bf16.mxu1 %v4276_v39  ;;  %v4363_v38 = vld [vmem:[#allocation5 + $0x4e4] ss:$16 sps:$4 sm:$0xff]   ;;  %v4366_v39 = vld [vmem:[#allocation5 + $0x4ec] ss:$16 sps:$4 sm:$0xff]  }
  0xbd   :  { %2686 = vmatpush1.bf16.msra.mxu0 %v4271_v40  ;;  %2973 = vmatpush1.bf16.msra.mxu1 %v4274_v41  ;;  %v4361_v40 = vld [vmem:[#allocation5 + $0x4e0] ss:$16 sps:$4 sm:$0xff]   ;;  %v4364_v41 = vld [vmem:[#allocation5 + $0x4e8] ss:$16 sps:$4 sm:$0xff]  }
  0xbe   :  { %2687 = vmatprep.subr.bf16.mxu0 %v4279_v42  ;;  %2974 = vmatprep.subr.bf16.mxu1 %v4282_v43  ;;  %v4369_v42 = vld [vmem:[#allocation5 + $0x504] ss:$16 sps:$4 sm:$0xff]   ;;  %v4372_v43 = vld [vmem:[#allocation5 + $0x50c] ss:$16 sps:$4 sm:$0xff]  }
  0xc1   :  { %2688 = vmatpush1.bf16.msra.mxu0 %v4277_v44  ;;  %2975 = vmatpush1.bf16.msra.mxu1 %v4280_v45  ;;  %v4367_v44 = vld [vmem:[#allocation5 + $0x500] ss:$16 sps:$4 sm:$0xff]   ;;  %v4370_v45 = vld [vmem:[#allocation5 + $0x508] ss:$16 sps:$4 sm:$0xff]  }
  0xc2   :  { %2689 = vmatprep.subr.bf16.mxu0 %v4285_v46  ;;  %2976 = vmatprep.subr.bf16.mxu1 %v4288_v47  ;;  %v4375_v46 = vld [vmem:[#allocation5 + $0x524] ss:$16 sps:$4 sm:$0xff]   ;;  %v4378_v47 = vld [vmem:[#allocation5 + $0x52c] ss:$16 sps:$4 sm:$0xff]  }
  0xc5   :  { %2690 = vmatpush1.bf16.msra.mxu0 %v4283_v48  ;;  %2977 = vmatpush1.bf16.msra.mxu1 %v4286_v49  ;;  %v4373_v48 = vld [vmem:[#allocation5 + $0x520] ss:$16 sps:$4 sm:$0xff]   ;;  %v4376_v49 = vld [vmem:[#allocation5 + $0x528] ss:$16 sps:$4 sm:$0xff]  }
  0xc6   :  { %2691 = vmatprep.subr.bf16.mxu0 %v4291_v50  ;;  %2978 = vmatprep.subr.bf16.mxu1 %v4294_v51  ;;  %v4381_v50 = vld [vmem:[#allocation5 + $0x544] ss:$16 sps:$4 sm:$0xff]   ;;  %v4384_v51 = vld [vmem:[#allocation5 + $0x54c] ss:$16 sps:$4 sm:$0xff]  }
  0xc9   :  { %2692 = vmatpush1.bf16.msra.mxu0 %v4289_v52  ;;  %2979 = vmatpush1.bf16.msra.mxu1 %v4292_v53  ;;  %v4379_v52 = vld [vmem:[#allocation5 + $0x540] ss:$16 sps:$4 sm:$0xff]   ;;  %v4382_v53 = vld [vmem:[#allocation5 + $0x548] ss:$16 sps:$4 sm:$0xff]  }
  0xca   :  { %2693 = vmatprep.subr.bf16.mxu0 %v4297_v54  ;;  %2980 = vmatprep.subr.bf16.mxu1 %v4300_v55  ;;  %v4387_v54 = vld [vmem:[#allocation5 + $0x564] ss:$16 sps:$4 sm:$0xff]   ;;  %v4390_v55 = vld [vmem:[#allocation5 + $0x56c] ss:$16 sps:$4 sm:$0xff]  }
  0xcd   :  { %2694 = vmatpush1.bf16.msra.mxu0 %v4295_v56  ;;  %2981 = vmatpush1.bf16.msra.mxu1 %v4298_v57  ;;  %v4385_v56 = vld [vmem:[#allocation5 + $0x560] ss:$16 sps:$4 sm:$0xff]   ;;  %v4388_v57 = vld [vmem:[#allocation5 + $0x568] ss:$16 sps:$4 sm:$0xff]  }
  0xce   :  { %2695 = vmatprep.subr.bf16.mxu0 %v4303_v58  ;;  %2982 = vmatprep.subr.bf16.mxu1 %v4306_v59  ;;  %v4393_v58 = vld [vmem:[#allocation5 + $0x584] ss:$16 sps:$4 sm:$0xff]   ;;  %v4396_v59 = vld [vmem:[#allocation5 + $0x58c] ss:$16 sps:$4 sm:$0xff]  }
  0xd1   :  { %2696 = vmatpush1.bf16.msra.mxu0 %v4301_v60  ;;  %2983 = vmatpush1.bf16.msra.mxu1 %v4304_v61  ;;  %v4391_v60 = vld [vmem:[#allocation5 + $0x580] ss:$16 sps:$4 sm:$0xff]   ;;  %v4394_v61 = vld [vmem:[#allocation5 + $0x588] ss:$16 sps:$4 sm:$0xff]  }
  0xd2   :  { %2697 = vmatprep.subr.bf16.mxu0 %v4309_v62  ;;  %2984 = vmatprep.subr.bf16.mxu1 %v4312_v63  ;;  %v4399_v62 = vld [vmem:[#allocation5 + $0x5a4] ss:$16 sps:$4 sm:$0xff]   ;;  %v4402_v63 = vld [vmem:[#allocation5 + $0x5ac] ss:$16 sps:$4 sm:$0xff]  }
  0xd5   :  { %2698 = vmatpush1.bf16.msra.mxu0 %v4307_v0  ;;  %2985 = vmatpush1.bf16.msra.mxu1 %v4310_v1  ;;  %v4397_v0 = vld [vmem:[#allocation5 + $0x5a0] ss:$16 sps:$4 sm:$0xff]   ;;  %v4400_v1 = vld [vmem:[#allocation5 + $0x5a8] ss:$16 sps:$4 sm:$0xff]  }
  0xd6   :  { %2699 = vmatprep.subr.bf16.mxu0 %v4315_v2  ;;  %2986 = vmatprep.subr.bf16.mxu1 %v4318_v3  ;;  %v4405_v2 = vld [vmem:[#allocation5 + $0x5c4] ss:$16 sps:$4 sm:$0xff]   ;;  %v4408_v3 = vld [vmem:[#allocation5 + $0x5cc] ss:$16 sps:$4 sm:$0xff]  }
  0xd9   :  { %2700 = vmatpush1.bf16.msra.mxu0 %v4313_v4  ;;  %2987 = vmatpush1.bf16.msra.mxu1 %v4316_v5  ;;  %v4403_v4 = vld [vmem:[#allocation5 + $0x5c0] ss:$16 sps:$4 sm:$0xff]   ;;  %v4406_v5 = vld [vmem:[#allocation5 + $0x5c8] ss:$16 sps:$4 sm:$0xff]  }
  0xda   :  { %2710 = vmatprep.subr.bf16.mxu0 %v4321_v6  ;;  %2997 = vmatprep.subr.bf16.mxu1 %v4324_v8  ;;  %v4411_v6 = vld [vmem:[#allocation5 + $0x5e4] ss:$16 sps:$4 sm:$0xff]   ;;  %v4409_v8 = vld [vmem:[#allocation5 + $0x5e0] ss:$16 sps:$4 sm:$0xff]  }
  0xdc   :  { %2702 = vmatmul.mubr.bf16.vlgmr.msra.gmra.mrb[0].mxu0 %v99_v11  ;;  %2989 = vmatmul.mubr.bf16.vlgmr.msra.gmra.mrb[0].mxu1 %v99_v11  ;;  %v88_v11 = vld [vmem:[#allocation2 + $0x20] sm:$0xff] }
  0xdd   :  { %2711 = vmatpush1.bf16.msra.mxu0 %v4319_v9  ;;  %2998 = vmatpush1.bf16.msra.mxu1 %v4322_v10  ;;  %v4412_v9 = vld [vmem:[#allocation5 + $0x5e8] ss:$16 sps:$4 sm:$0xff]   ;;  %v4417_v10 = vld [vmem:[#allocation5 + $0x604] ss:$16 sps:$4 sm:$0xff]  }
  0xde   :  { %2712 = vmatprep.subr.bf16.mxu0 %v4327_v12  ;;  %2999 = vmatprep.subr.bf16.mxu1 %v4330_v13  ;;  %v4420_v12 = vld [vmem:[#allocation5 + $0x60c] ss:$16 sps:$4 sm:$0xff]   ;;  %v4415_v13 = vld [vmem:[#allocation5 + $0x600] ss:$16 sps:$4 sm:$0xff]  }
  0xdf   :  { %2742 = vmatprep.mubr.bf16.mxu0 %v102_v15  ;;  %3029 = vmatprep.mubr.bf16.mxu1 %v102_v15  ;;  %v101_v15 = vpack.c.bf16 %v88_v11, %v88_v11  ;;  %v4510_v11 = vld [vmem:[#allocation5 + $0x7ec] ss:$16 sps:$4 sm:$0xff]  }
  0xe1   :  { %2713 = vmatpush1.bf16.msra.mxu0 %v4325_v16  ;;  %3000 = vmatpush1.bf16.msra.mxu1 %v4328_v17  ;;  %v91_v16 = vld [vmem:[#allocation2 + $0x38] sm:$0xff] }
  0xe2   :  { %2714 = vmatprep.subr.bf16.mxu0 %v4333_v18  ;;  %3001 = vmatprep.subr.bf16.mxu1 %v4336_v19  ;;  %v4423_v17 = vld [vmem:[#allocation5 + $0x624] ss:$16 sps:$4 sm:$0xff]   ;;  %v4426_v18 = vld [vmem:[#allocation5 + $0x62c] ss:$16 sps:$4 sm:$0xff]   ;;  %v104_v19 = vpack.c.bf16 %v91_v16, %v91_v16 }
  0xe3   :  { %v4516_v16 = vld [vmem:[#allocation5 + $0x80c] ss:$16 sps:$4 sm:$0xff]  }
  0xe5   :  { %2715 = vmatpush1.bf16.msra.mxu0 %v4331_v20  ;;  %3002 = vmatpush1.bf16.msra.mxu1 %v4334_v21  ;;  %v4421_v20 = vld [vmem:[#allocation5 + $0x620] ss:$16 sps:$4 sm:$0xff]   ;;  %v4424_v21 = vld [vmem:[#allocation5 + $0x628] ss:$16 sps:$4 sm:$0xff]  }
  0xe6   :  { %2716 = vmatprep.subr.bf16.mxu0 %v4339_v22  ;;  %3003 = vmatprep.subr.bf16.mxu1 %v4342_v23  ;;  %v4429_v22 = vld [vmem:[#allocation5 + $0x644] ss:$16 sps:$4 sm:$0xff]   ;;  %v4432_v23 = vld [vmem:[#allocation5 + $0x64c] ss:$16 sps:$4 sm:$0xff]  }
  0xe9   :  { %2717 = vmatpush1.bf16.msra.mxu0 %v4337_v24  ;;  %3004 = vmatpush1.bf16.msra.mxu1 %v4340_v25  ;;  %v4427_v24 = vld [vmem:[#allocation5 + $0x640] ss:$16 sps:$4 sm:$0xff]   ;;  %v4430_v25 = vld [vmem:[#allocation5 + $0x648] ss:$16 sps:$4 sm:$0xff]  }
  0xea   :  { %2718 = vmatprep.subr.bf16.mxu0 %v4345_v26  ;;  %3005 = vmatprep.subr.bf16.mxu1 %v4348_v27  ;;  %v4435_v26 = vld [vmem:[#allocation5 + $0x664] ss:$16 sps:$4 sm:$0xff]   ;;  %v4438_v27 = vld [vmem:[#allocation5 + $0x66c] ss:$16 sps:$4 sm:$0xff]  }
  0xed   :  { %2719 = vmatpush1.bf16.msra.mxu0 %v4343_v28  ;;  %3006 = vmatpush1.bf16.msra.mxu1 %v4346_v29  ;;  %v4433_v28 = vld [vmem:[#allocation5 + $0x660] ss:$16 sps:$4 sm:$0xff]   ;;  %v4436_v29 = vld [vmem:[#allocation5 + $0x668] ss:$16 sps:$4 sm:$0xff]  }
  0xee   :  { %2720 = vmatprep.subr.bf16.mxu0 %v4351_v30  ;;  %3007 = vmatprep.subr.bf16.mxu1 %v4354_v31  ;;  %v4441_v30 = vld [vmem:[#allocation5 + $0x684] ss:$16 sps:$4 sm:$0xff]   ;;  %v4444_v31 = vld [vmem:[#allocation5 + $0x68c] ss:$16 sps:$4 sm:$0xff]  }
  0xf1   :  { %2721 = vmatpush1.bf16.msra.mxu0 %v4349_v32  ;;  %3008 = vmatpush1.bf16.msra.mxu1 %v4352_v33  ;;  %v4439_v32 = vld [vmem:[#allocation5 + $0x680] ss:$16 sps:$4 sm:$0xff]   ;;  %v4442_v33 = vld [vmem:[#allocation5 + $0x688] ss:$16 sps:$4 sm:$0xff]  }
  0xf2   :  { %2722 = vmatprep.subr.bf16.mxu0 %v4357_v34  ;;  %3009 = vmatprep.subr.bf16.mxu1 %v4360_v35  ;;  %v4447_v34 = vld [vmem:[#allocation5 + $0x6a4] ss:$16 sps:$4 sm:$0xff]   ;;  %v4450_v35 = vld [vmem:[#allocation5 + $0x6ac] ss:$16 sps:$4 sm:$0xff]  }
  0xf5   :  { %2723 = vmatpush1.bf16.msra.mxu0 %v4355_v36  ;;  %3010 = vmatpush1.bf16.msra.mxu1 %v4358_v37  ;;  %v4445_v36 = vld [vmem:[#allocation5 + $0x6a0] ss:$16 sps:$4 sm:$0xff]   ;;  %v4448_v37 = vld [vmem:[#allocation5 + $0x6a8] ss:$16 sps:$4 sm:$0xff]  }
  0xf6   :  { %2724 = vmatprep.subr.bf16.mxu0 %v4363_v38  ;;  %3011 = vmatprep.subr.bf16.mxu1 %v4366_v39  ;;  %v4453_v38 = vld [vmem:[#allocation5 + $0x6c4] ss:$16 sps:$4 sm:$0xff]   ;;  %v4456_v39 = vld [vmem:[#allocation5 + $0x6cc] ss:$16 sps:$4 sm:$0xff]  }
  0xf9   :  { %2725 = vmatpush1.bf16.msra.mxu0 %v4361_v40  ;;  %3012 = vmatpush1.bf16.msra.mxu1 %v4364_v41  ;;  %v4451_v40 = vld [vmem:[#allocation5 + $0x6c0] ss:$16 sps:$4 sm:$0xff]   ;;  %v4454_v41 = vld [vmem:[#allocation5 + $0x6c8] ss:$16 sps:$4 sm:$0xff]  }
  0xfa   :  { %2726 = vmatprep.subr.bf16.mxu0 %v4369_v42  ;;  %3013 = vmatprep.subr.bf16.mxu1 %v4372_v43  ;;  %v4459_v42 = vld [vmem:[#allocation5 + $0x6e4] ss:$16 sps:$4 sm:$0xff]   ;;  %v4462_v43 = vld [vmem:[#allocation5 + $0x6ec] ss:$16 sps:$4 sm:$0xff]  }
  0xfd   :  { %2727 = vmatpush1.bf16.msra.mxu0 %v4367_v44  ;;  %3014 = vmatpush1.bf16.msra.mxu1 %v4370_v45  ;;  %v4457_v44 = vld [vmem:[#allocation5 + $0x6e0] ss:$16 sps:$4 sm:$0xff]   ;;  %v4460_v45 = vld [vmem:[#allocation5 + $0x6e8] ss:$16 sps:$4 sm:$0xff]  }
  0xfe   :  { %2728 = vmatprep.subr.bf16.mxu0 %v4375_v46  ;;  %3015 = vmatprep.subr.bf16.mxu1 %v4378_v47  ;;  %v4465_v46 = vld [vmem:[#allocation5 + $0x704] ss:$16 sps:$4 sm:$0xff]   ;;  %v4468_v47 = vld [vmem:[#allocation5 + $0x70c] ss:$16 sps:$4 sm:$0xff]  }
 0x101   :  { %2729 = vmatpush1.bf16.msra.mxu0 %v4373_v48  ;;  %3016 = vmatpush1.bf16.msra.mxu1 %v4376_v49  ;;  %v4463_v48 = vld [vmem:[#allocation5 + $0x700] ss:$16 sps:$4 sm:$0xff]   ;;  %v4466_v49 = vld [vmem:[#allocation5 + $0x708] ss:$16 sps:$4 sm:$0xff]  }
 0x102   :  { %2730 = vmatprep.subr.bf16.mxu0 %v4381_v50  ;;  %3017 = vmatprep.subr.bf16.mxu1 %v4384_v51  ;;  %v4471_v50 = vld [vmem:[#allocation5 + $0x724] ss:$16 sps:$4 sm:$0xff]   ;;  %v4474_v51 = vld [vmem:[#allocation5 + $0x72c] ss:$16 sps:$4 sm:$0xff]  }
 0x105   :  { %2731 = vmatpush1.bf16.msra.mxu0 %v4379_v52  ;;  %3018 = vmatpush1.bf16.msra.mxu1 %v4382_v53  ;;  %v4469_v52 = vld [vmem:[#allocation5 + $0x720] ss:$16 sps:$4 sm:$0xff]   ;;  %v4472_v53 = vld [vmem:[#allocation5 + $0x728] ss:$16 sps:$4 sm:$0xff]  }
 0x106   :  { %2732 = vmatprep.subr.bf16.mxu0 %v4387_v54  ;;  %3019 = vmatprep.subr.bf16.mxu1 %v4390_v55  ;;  %v4477_v54 = vld [vmem:[#allocation5 + $0x744] ss:$16 sps:$4 sm:$0xff]   ;;  %v4480_v55 = vld [vmem:[#allocation5 + $0x74c] ss:$16 sps:$4 sm:$0xff]  }
 0x109   :  { %2733 = vmatpush1.bf16.msra.mxu0 %v4385_v56  ;;  %3020 = vmatpush1.bf16.msra.mxu1 %v4388_v57  ;;  %v4475_v56 = vld [vmem:[#allocation5 + $0x740] ss:$16 sps:$4 sm:$0xff]   ;;  %v4478_v57 = vld [vmem:[#allocation5 + $0x748] ss:$16 sps:$4 sm:$0xff]  }
 0x10a   :  { %2734 = vmatprep.subr.bf16.mxu0 %v4393_v58  ;;  %3021 = vmatprep.subr.bf16.mxu1 %v4396_v59  ;;  %v4483_v58 = vld [vmem:[#allocation5 + $0x764] ss:$16 sps:$4 sm:$0xff]   ;;  %v4486_v59 = vld [vmem:[#allocation5 + $0x76c] ss:$16 sps:$4 sm:$0xff]  }
 0x10d   :  { %2735 = vmatpush1.bf16.msra.mxu0 %v4391_v60  ;;  %3022 = vmatpush1.bf16.msra.mxu1 %v4394_v61  ;;  %v4481_v60 = vld [vmem:[#allocation5 + $0x760] ss:$16 sps:$4 sm:$0xff]   ;;  %v4484_v61 = vld [vmem:[#allocation5 + $0x768] ss:$16 sps:$4 sm:$0xff]  }
 0x10e   :  { %2736 = vmatprep.subr.bf16.mxu0 %v4399_v62  ;;  %3023 = vmatprep.subr.bf16.mxu1 %v4402_v63  ;;  %v4489_v62 = vld [vmem:[#allocation5 + $0x784] ss:$16 sps:$4 sm:$0xff]   ;;  %v4492_v63 = vld [vmem:[#allocation5 + $0x78c] ss:$16 sps:$4 sm:$0xff]  }
 0x111   :  { %2737 = vmatpush1.bf16.msra.mxu0 %v4397_v0  ;;  %3024 = vmatpush1.bf16.msra.mxu1 %v4400_v1  ;;  %v4487_v0 = vld [vmem:[#allocation5 + $0x780] ss:$16 sps:$4 sm:$0xff]   ;;  %v4490_v1 = vld [vmem:[#allocation5 + $0x788] ss:$16 sps:$4 sm:$0xff]  }
 0x112   :  { %2738 = vmatprep.subr.bf16.mxu0 %v4405_v2  ;;  %3025 = vmatprep.subr.bf16.mxu1 %v4408_v3  ;;  %v4495_v2 = vld [vmem:[#allocation5 + $0x7a4] ss:$16 sps:$4 sm:$0xff]   ;;  %v4498_v3 = vld [vmem:[#allocation5 + $0x7ac] ss:$16 sps:$4 sm:$0xff]  }
 0x115   :  { %2739 = vmatpush1.bf16.msra.mxu0 %v4403_v4  ;;  %3026 = vmatpush1.bf16.msra.mxu1 %v4406_v5  ;;  %v4493_v4 = vld [vmem:[#allocation5 + $0x7a0] ss:$16 sps:$4 sm:$0xff]   ;;  %v4496_v5 = vld [vmem:[#allocation5 + $0x7a8] ss:$16 sps:$4 sm:$0xff]  }
 0x116   :  { %2740 = vmatprep.subr.bf16.mxu0 %v4411_v6  ;;  %3027 = vmatprep.subr.bf16.mxu1 %v4414_v7  ;;  %v4501_v6 = vld [vmem:[#allocation5 + $0x7c4] ss:$16 sps:$4 sm:$0xff]   ;;  %v4504_v7 = vld [vmem:[#allocation5 + $0x7cc] ss:$16 sps:$4 sm:$0xff]  }
 0x119   :  { %2741 = vmatpush1.bf16.msra.mxu0 %v4409_v8  ;;  %3028 = vmatpush1.bf16.msra.mxu1 %v4412_v9  ;;  %v4499_v8 = vld [vmem:[#allocation5 + $0x7c0] ss:$16 sps:$4 sm:$0xff]   ;;  %v4502_v9 = vld [vmem:[#allocation5 + $0x7c8] ss:$16 sps:$4 sm:$0xff]  }
 0x11a   :  { %2751 = vmatprep.subr.bf16.mxu0 %v4417_v10  ;;  %3038 = vmatprep.subr.bf16.mxu1 %v4420_v12  ;;  %v4507_v10 = vld [vmem:[#allocation5 + $0x7e4] ss:$16 sps:$4 sm:$0xff]   ;;  %v4505_v12 = vld [vmem:[#allocation5 + $0x7e0] ss:$16 sps:$4 sm:$0xff]  }
 0x11c   :  { %2743 = vmatmul.mubr.bf16.vlgmr.msra.gmra.mrb[0].mxu0 %v101_v15  ;;  %3030 = vmatmul.mubr.bf16.vlgmr.msra.gmra.mrb[0].mxu1 %v101_v15  ;;  %v4513_v15 = vld [vmem:[#allocation5 + $0x804] ss:$16 sps:$4 sm:$0xff]  }
 0x11d   :  { %2752 = vmatpush1.bf16.msra.mxu0 %v4415_v13  ;;  %3039 = vmatpush1.bf16.msra.mxu1 %v4418_v14  ;;  %v4508_v13 = vld [vmem:[#allocation5 + $0x7e8] ss:$16 sps:$4 sm:$0xff]  }
 0x11e   :  { %2753 = vmatprep.subr.bf16.mxu0 %v4423_v17  ;;  %3040 = vmatprep.subr.bf16.mxu1 %v4426_v18  ;;  %v90_v14 = vld [vmem:[#allocation2 + $0x30] sm:$0xff]  ;;  %v93_v18 = vld [vmem:[#allocation2 + $0x48] sm:$0xff] }
 0x11f   :  { %2783 = vmatprep.mubr.bf16.mxu0 %v104_v19  ;;  %3070 = vmatprep.mubr.bf16.mxu1 %v104_v19  ;;  %v103_v17 = vpack.c.bf16 %v90_v14, %v90_v14  ;;  %v4511_v19 = vld [vmem:[#allocation5 + $0x800] ss:$16 sps:$4 sm:$0xff]   ;;  %v4603_v14 = vld [vmem:[#allocation5 + $0x9e4] ss:$16 sps:$4 sm:$0xff]  }
 0x121   :  { %2754 = vmatpush1.bf16.msra.mxu0 %v4421_v20  ;;  %3041 = vmatpush1.bf16.msra.mxu1 %v4424_v21  ;;  %v4514_v20 = vld [vmem:[#allocation5 + $0x808] ss:$16 sps:$4 sm:$0xff]   ;;  %v4519_v21 = vld [vmem:[#allocation5 + $0x824] ss:$16 sps:$4 sm:$0xff]  }
 0x122   :  { %2755 = vmatprep.subr.bf16.mxu0 %v4429_v22  ;;  %3042 = vmatprep.subr.bf16.mxu1 %v4432_v23  ;;  %v4522_v22 = vld [vmem:[#allocation5 + $0x82c] ss:$16 sps:$4 sm:$0xff]   ;;  %v106_v23 = vpack.c.bf16 %v93_v18, %v93_v18 }
 0x123   :  { %v92_v18 = vld [vmem:[#allocation2 + $0x40] sm:$0xff] }
 0x125   :  { %2756 = vmatpush1.bf16.msra.mxu0 %v4427_v24  ;;  %3043 = vmatpush1.bf16.msra.mxu1 %v4430_v25  ;;  %v4517_v24 = vld [vmem:[#allocation5 + $0x820] ss:$16 sps:$4 sm:$0xff]   ;;  %v4520_v25 = vld [vmem:[#allocation5 + $0x828] ss:$16 sps:$4 sm:$0xff]  }
 0x126   :  { %2757 = vmatprep.subr.bf16.mxu0 %v4435_v26  ;;  %3044 = vmatprep.subr.bf16.mxu1 %v4438_v27  ;;  %v4525_v26 = vld [vmem:[#allocation5 + $0x844] ss:$16 sps:$4 sm:$0xff]   ;;  %v4528_v27 = vld [vmem:[#allocation5 + $0x84c] ss:$16 sps:$4 sm:$0xff]  }
 0x129   :  { %2758 = vmatpush1.bf16.msra.mxu0 %v4433_v28  ;;  %3045 = vmatpush1.bf16.msra.mxu1 %v4436_v29  ;;  %v4523_v28 = vld [vmem:[#allocation5 + $0x840] ss:$16 sps:$4 sm:$0xff]   ;;  %v4526_v29 = vld [vmem:[#allocation5 + $0x848] ss:$16 sps:$4 sm:$0xff]  }
 0x12a   :  { %2759 = vmatprep.subr.bf16.mxu0 %v4441_v30  ;;  %3046 = vmatprep.subr.bf16.mxu1 %v4444_v31  ;;  %v4531_v30 = vld [vmem:[#allocation5 + $0x864] ss:$16 sps:$4 sm:$0xff]   ;;  %v4534_v31 = vld [vmem:[#allocation5 + $0x86c] ss:$16 sps:$4 sm:$0xff]  }
 0x12d   :  { %2760 = vmatpush1.bf16.msra.mxu0 %v4439_v32  ;;  %3047 = vmatpush1.bf16.msra.mxu1 %v4442_v33  ;;  %v4529_v32 = vld [vmem:[#allocation5 + $0x860] ss:$16 sps:$4 sm:$0xff]   ;;  %v4532_v33 = vld [vmem:[#allocation5 + $0x868] ss:$16 sps:$4 sm:$0xff]  }
 0x12e   :  { %2761 = vmatprep.subr.bf16.mxu0 %v4447_v34  ;;  %3048 = vmatprep.subr.bf16.mxu1 %v4450_v35  ;;  %v4537_v34 = vld [vmem:[#allocation5 + $0x884] ss:$16 sps:$4 sm:$0xff]   ;;  %v4540_v35 = vld [vmem:[#allocation5 + $0x88c] ss:$16 sps:$4 sm:$0xff]  }
 0x131   :  { %2762 = vmatpush1.bf16.msra.mxu0 %v4445_v36  ;;  %3049 = vmatpush1.bf16.msra.mxu1 %v4448_v37  ;;  %v4535_v36 = vld [vmem:[#allocation5 + $0x880] ss:$16 sps:$4 sm:$0xff]   ;;  %v4538_v37 = vld [vmem:[#allocation5 + $0x888] ss:$16 sps:$4 sm:$0xff]  }
 0x132   :  { %2763 = vmatprep.subr.bf16.mxu0 %v4453_v38  ;;  %3050 = vmatprep.subr.bf16.mxu1 %v4456_v39  ;;  %v4543_v38 = vld [vmem:[#allocation5 + $0x8a4] ss:$16 sps:$4 sm:$0xff]   ;;  %v4546_v39 = vld [vmem:[#allocation5 + $0x8ac] ss:$16 sps:$4 sm:$0xff]  }
 0x135   :  { %2764 = vmatpush1.bf16.msra.mxu0 %v4451_v40  ;;  %3051 = vmatpush1.bf16.msra.mxu1 %v4454_v41  ;;  %v4541_v40 = vld [vmem:[#allocation5 + $0x8a0] ss:$16 sps:$4 sm:$0xff]   ;;  %v4544_v41 = vld [vmem:[#allocation5 + $0x8a8] ss:$16 sps:$4 sm:$0xff]  }
 0x136   :  { %2765 = vmatprep.subr.bf16.mxu0 %v4459_v42  ;;  %3052 = vmatprep.subr.bf16.mxu1 %v4462_v43  ;;  %v4549_v42 = vld [vmem:[#allocation5 + $0x8c4] ss:$16 sps:$4 sm:$0xff]   ;;  %v4552_v43 = vld [vmem:[#allocation5 + $0x8cc] ss:$16 sps:$4 sm:$0xff]  }
 0x139   :  { %2766 = vmatpush1.bf16.msra.mxu0 %v4457_v44  ;;  %3053 = vmatpush1.bf16.msra.mxu1 %v4460_v45  ;;  %v4547_v44 = vld [vmem:[#allocation5 + $0x8c0] ss:$16 sps:$4 sm:$0xff]   ;;  %v4550_v45 = vld [vmem:[#allocation5 + $0x8c8] ss:$16 sps:$4 sm:$0xff]  }
 0x13a   :  { %2767 = vmatprep.subr.bf16.mxu0 %v4465_v46  ;;  %3054 = vmatprep.subr.bf16.mxu1 %v4468_v47  ;;  %v4555_v46 = vld [vmem:[#allocation5 + $0x8e4] ss:$16 sps:$4 sm:$0xff]   ;;  %v4558_v47 = vld [vmem:[#allocation5 + $0x8ec] ss:$16 sps:$4 sm:$0xff]  }
 0x13d   :  { %2768 = vmatpush1.bf16.msra.mxu0 %v4463_v48  ;;  %3055 = vmatpush1.bf16.msra.mxu1 %v4466_v49  ;;  %v4553_v48 = vld [vmem:[#allocation5 + $0x8e0] ss:$16 sps:$4 sm:$0xff]   ;;  %v4556_v49 = vld [vmem:[#allocation5 + $0x8e8] ss:$16 sps:$4 sm:$0xff]  }
 0x13e   :  { %2769 = vmatprep.subr.bf16.mxu0 %v4471_v50  ;;  %3056 = vmatprep.subr.bf16.mxu1 %v4474_v51  ;;  %v4561_v50 = vld [vmem:[#allocation5 + $0x904] ss:$16 sps:$4 sm:$0xff]   ;;  %v4564_v51 = vld [vmem:[#allocation5 + $0x90c] ss:$16 sps:$4 sm:$0xff]  }
 0x141   :  { %2770 = vmatpush1.bf16.msra.mxu0 %v4469_v52  ;;  %3057 = vmatpush1.bf16.msra.mxu1 %v4472_v53  ;;  %v4559_v52 = vld [vmem:[#allocation5 + $0x900] ss:$16 sps:$4 sm:$0xff]   ;;  %v4562_v53 = vld [vmem:[#allocation5 + $0x908] ss:$16 sps:$4 sm:$0xff]  }
 0x142   :  { %2771 = vmatprep.subr.bf16.mxu0 %v4477_v54  ;;  %3058 = vmatprep.subr.bf16.mxu1 %v4480_v55  ;;  %v4567_v54 = vld [vmem:[#allocation5 + $0x924] ss:$16 sps:$4 sm:$0xff]   ;;  %v4570_v55 = vld [vmem:[#allocation5 + $0x92c] ss:$16 sps:$4 sm:$0xff]  }
 0x145   :  { %2772 = vmatpush1.bf16.msra.mxu0 %v4475_v56  ;;  %3059 = vmatpush1.bf16.msra.mxu1 %v4478_v57  ;;  %v4565_v56 = vld [vmem:[#allocation5 + $0x920] ss:$16 sps:$4 sm:$0xff]   ;;  %v4568_v57 = vld [vmem:[#allocation5 + $0x928] ss:$16 sps:$4 sm:$0xff]  }
 0x146   :  { %2773 = vmatprep.subr.bf16.mxu0 %v4483_v58  ;;  %3060 = vmatprep.subr.bf16.mxu1 %v4486_v59  ;;  %v4573_v58 = vld [vmem:[#allocation5 + $0x944] ss:$16 sps:$4 sm:$0xff]   ;;  %v4576_v59 = vld [vmem:[#allocation5 + $0x94c] ss:$16 sps:$4 sm:$0xff]  }
 0x149   :  { %2774 = vmatpush1.bf16.msra.mxu0 %v4481_v60  ;;  %3061 = vmatpush1.bf16.msra.mxu1 %v4484_v61  ;;  %v4571_v60 = vld [vmem:[#allocation5 + $0x940] ss:$16 sps:$4 sm:$0xff]   ;;  %v4574_v61 = vld [vmem:[#allocation5 + $0x948] ss:$16 sps:$4 sm:$0xff]  }
 0x14a   :  { %2775 = vmatprep.subr.bf16.mxu0 %v4489_v62  ;;  %3062 = vmatprep.subr.bf16.mxu1 %v4492_v63  ;;  %v4579_v62 = vld [vmem:[#allocation5 + $0x964] ss:$16 sps:$4 sm:$0xff]   ;;  %v4582_v63 = vld [vmem:[#allocation5 + $0x96c] ss:$16 sps:$4 sm:$0xff]  }
 0x14d   :  { %2776 = vmatpush1.bf16.msra.mxu0 %v4487_v0  ;;  %3063 = vmatpush1.bf16.msra.mxu1 %v4490_v1  ;;  %v4577_v0 = vld [vmem:[#allocation5 + $0x960] ss:$16 sps:$4 sm:$0xff]   ;;  %v4580_v1 = vld [vmem:[#allocation5 + $0x968] ss:$16 sps:$4 sm:$0xff]  }
 0x14e   :  { %2777 = vmatprep.subr.bf16.mxu0 %v4495_v2  ;;  %3064 = vmatprep.subr.bf16.mxu1 %v4498_v3  ;;  %v4585_v2 = vld [vmem:[#allocation5 + $0x984] ss:$16 sps:$4 sm:$0xff]   ;;  %v4588_v3 = vld [vmem:[#allocation5 + $0x98c] ss:$16 sps:$4 sm:$0xff]  }
 0x151   :  { %2778 = vmatpush1.bf16.msra.mxu0 %v4493_v4  ;;  %3065 = vmatpush1.bf16.msra.mxu1 %v4496_v5  ;;  %v4583_v4 = vld [vmem:[#allocation5 + $0x980] ss:$16 sps:$4 sm:$0xff]   ;;  %v4586_v5 = vld [vmem:[#allocation5 + $0x988] ss:$16 sps:$4 sm:$0xff]  }
 0x152   :  { %2779 = vmatprep.subr.bf16.mxu0 %v4501_v6  ;;  %3066 = vmatprep.subr.bf16.mxu1 %v4504_v7  ;;  %v4591_v6 = vld [vmem:[#allocation5 + $0x9a4] ss:$16 sps:$4 sm:$0xff]   ;;  %v4594_v7 = vld [vmem:[#allocation5 + $0x9ac] ss:$16 sps:$4 sm:$0xff]  }
 0x155   :  { %2780 = vmatpush1.bf16.msra.mxu0 %v4499_v8  ;;  %3067 = vmatpush1.bf16.msra.mxu1 %v4502_v9  ;;  %v4589_v8 = vld [vmem:[#allocation5 + $0x9a0] ss:$16 sps:$4 sm:$0xff]   ;;  %v4592_v9 = vld [vmem:[#allocation5 + $0x9a8] ss:$16 sps:$4 sm:$0xff]  }
 0x156   :  { %2781 = vmatprep.subr.bf16.mxu0 %v4507_v10  ;;  %3068 = vmatprep.subr.bf16.mxu1 %v4510_v11  ;;  %v4597_v10 = vld [vmem:[#allocation5 + $0x9c4] ss:$16 sps:$4 sm:$0xff]   ;;  %v4600_v11 = vld [vmem:[#allocation5 + $0x9cc] ss:$16 sps:$4 sm:$0xff]  }
 0x159   :  { %2782 = vmatpush1.bf16.msra.mxu0 %v4505_v12  ;;  %3069 = vmatpush1.bf16.msra.mxu1 %v4508_v13  ;;  %v4595_v12 = vld [vmem:[#allocation5 + $0x9c0] ss:$16 sps:$4 sm:$0xff]   ;;  %v4598_v13 = vld [vmem:[#allocation5 + $0x9c8] ss:$16 sps:$4 sm:$0xff]  }
 0x15a   :  { %2792 = vmatprep.subr.bf16.mxu0 %v4513_v15  ;;  %3079 = vmatprep.subr.bf16.mxu1 %v4516_v16  ;;  %v4606_v15 = vld [vmem:[#allocation5 + $0x9ec] ss:$16 sps:$4 sm:$0xff]   ;;  %v4601_v16 = vld [vmem:[#allocation5 + $0x9e0] ss:$16 sps:$4 sm:$0xff]  }
 0x15c   :  { %2784 = vmatmul.mubr.bf16.vlgmr.msra.gmra.mrb[0].mxu0 %v103_v17  ;;  %3071 = vmatmul.mubr.bf16.vlgmr.msra.gmra.mrb[0].mxu1 %v103_v17  ;;  %v4604_v17 = vld [vmem:[#allocation5 + $0x9e8] ss:$16 sps:$4 sm:$0xff]  }
 0x15d   :  { %2793 = vmatpush1.bf16.msra.mxu0 %v4511_v19  ;;  %3080 = vmatpush1.bf16.msra.mxu1 %v4514_v20  ;;  %v4609_v19 = vld [vmem:[#allocation5 + $0xa04] ss:$16 sps:$4 sm:$0xff]   ;;  %v4612_v20 = vld [vmem:[#allocation5 + $0xa0c] ss:$16 sps:$4 sm:$0xff]  }
 0x15e   :  { %2794 = vmatprep.subr.bf16.mxu0 %v4519_v21  ;;  %3081 = vmatprep.subr.bf16.mxu1 %v4522_v22  ;;  %v105_v21 = vpack.c.bf16 %v92_v18, %v92_v18  ;;  %v95_v22 = vld [vmem:[#allocation2 + $0x58] sm:$0xff] }
 0x15f   :  { %2824 = vmatprep.mubr.bf16.mxu0 %v106_v23  ;;  %3111 = vmatprep.mubr.bf16.mxu1 %v106_v23  ;;  %v4607_v23 = vld [vmem:[#allocation5 + $0xa00] ss:$16 sps:$4 sm:$0xff]   ;;  %v4699_v18 = vld [vmem:[#allocation5 + $0xbe4] ss:$16 sps:$4 sm:$0xff]  }
 0x161   :  { %2795 = vmatpush1.bf16.msra.mxu0 %v4517_v24  ;;  %3082 = vmatpush1.bf16.msra.mxu1 %v4520_v25  ;;  %v4610_v24 = vld [vmem:[#allocation5 + $0xa08] ss:$16 sps:$4 sm:$0xff]   ;;  %v4615_v25 = vld [vmem:[#allocation5 + $0xa24] ss:$16 sps:$4 sm:$0xff]  }
 0x162   :  { %2796 = vmatprep.subr.bf16.mxu0 %v4525_v26  ;;  %3083 = vmatprep.subr.bf16.mxu1 %v4528_v27  ;;  %v4618_v26 = vld [vmem:[#allocation5 + $0xa2c] ss:$16 sps:$4 sm:$0xff]   ;;  %v108_v27 = vpack.c.bf16 %v95_v22, %v95_v22 }
 0x163   :  { %v94_v22 = vld [vmem:[#allocation2 + $0x50] sm:$0xff] }
 0x165   :  { %2797 = vmatpush1.bf16.msra.mxu0 %v4523_v28  ;;  %3084 = vmatpush1.bf16.msra.mxu1 %v4526_v29  ;;  %v4613_v28 = vld [vmem:[#allocation5 + $0xa20] ss:$16 sps:$4 sm:$0xff]   ;;  %v4616_v29 = vld [vmem:[#allocation5 + $0xa28] ss:$16 sps:$4 sm:$0xff]  }
 0x166   :  { %2798 = vmatprep.subr.bf16.mxu0 %v4531_v30  ;;  %3085 = vmatprep.subr.bf16.mxu1 %v4534_v31  ;;  %v4621_v30 = vld [vmem:[#allocation5 + $0xa44] ss:$16 sps:$4 sm:$0xff]   ;;  %v4624_v31 = vld [vmem:[#allocation5 + $0xa4c] ss:$16 sps:$4 sm:$0xff]  }
 0x169   :  { %2799 = vmatpush1.bf16.msra.mxu0 %v4529_v32  ;;  %3086 = vmatpush1.bf16.msra.mxu1 %v4532_v33  ;;  %v4619_v32 = vld [vmem:[#allocation5 + $0xa40] ss:$16 sps:$4 sm:$0xff]   ;;  %v4622_v33 = vld [vmem:[#allocation5 + $0xa48] ss:$16 sps:$4 sm:$0xff]  }
 0x16a   :  { %2800 = vmatprep.subr.bf16.mxu0 %v4537_v34  ;;  %3087 = vmatprep.subr.bf16.mxu1 %v4540_v35  ;;  %v4627_v34 = vld [vmem:[#allocation5 + $0xa64] ss:$16 sps:$4 sm:$0xff]   ;;  %v4630_v35 = vld [vmem:[#allocation5 + $0xa6c] ss:$16 sps:$4 sm:$0xff]  }
 0x16d   :  { %2801 = vmatpush1.bf16.msra.mxu0 %v4535_v36  ;;  %3088 = vmatpush1.bf16.msra.mxu1 %v4538_v37  ;;  %v4625_v36 = vld [vmem:[#allocation5 + $0xa60] ss:$16 sps:$4 sm:$0xff]   ;;  %v4628_v37 = vld [vmem:[#allocation5 + $0xa68] ss:$16 sps:$4 sm:$0xff]  }
 0x16e   :  { %2802 = vmatprep.subr.bf16.mxu0 %v4543_v38  ;;  %3089 = vmatprep.subr.bf16.mxu1 %v4546_v39  ;;  %v4633_v38 = vld [vmem:[#allocation5 + $0xa84] ss:$16 sps:$4 sm:$0xff]   ;;  %v4636_v39 = vld [vmem:[#allocation5 + $0xa8c] ss:$16 sps:$4 sm:$0xff]  }
 0x171   :  { %2803 = vmatpush1.bf16.msra.mxu0 %v4541_v40  ;;  %3090 = vmatpush1.bf16.msra.mxu1 %v4544_v41  ;;  %v4631_v40 = vld [vmem:[#allocation5 + $0xa80] ss:$16 sps:$4 sm:$0xff]   ;;  %v4634_v41 = vld [vmem:[#allocation5 + $0xa88] ss:$16 sps:$4 sm:$0xff]  }
 0x172   :  { %2804 = vmatprep.subr.bf16.mxu0 %v4549_v42  ;;  %3091 = vmatprep.subr.bf16.mxu1 %v4552_v43  ;;  %v4639_v42 = vld [vmem:[#allocation5 + $0xaa4] ss:$16 sps:$4 sm:$0xff]   ;;  %v4642_v43 = vld [vmem:[#allocation5 + $0xaac] ss:$16 sps:$4 sm:$0xff]  }
 0x175   :  { %2805 = vmatpush1.bf16.msra.mxu0 %v4547_v44  ;;  %3092 = vmatpush1.bf16.msra.mxu1 %v4550_v45  ;;  %v4637_v44 = vld [vmem:[#allocation5 + $0xaa0] ss:$16 sps:$4 sm:$0xff]   ;;  %v4640_v45 = vld [vmem:[#allocation5 + $0xaa8] ss:$16 sps:$4 sm:$0xff]  }
 0x176   :  { %2806 = vmatprep.subr.bf16.mxu0 %v4555_v46  ;;  %3093 = vmatprep.subr.bf16.mxu1 %v4558_v47  ;;  %v4645_v46 = vld [vmem:[#allocation5 + $0xac4] ss:$16 sps:$4 sm:$0xff]   ;;  %v4648_v47 = vld [vmem:[#allocation5 + $0xacc] ss:$16 sps:$4 sm:$0xff]  }
 0x179   :  { %2807 = vmatpush1.bf16.msra.mxu0 %v4553_v48  ;;  %3094 = vmatpush1.bf16.msra.mxu1 %v4556_v49  ;;  %v4643_v48 = vld [vmem:[#allocation5 + $0xac0] ss:$16 sps:$4 sm:$0xff]   ;;  %v4646_v49 = vld [vmem:[#allocation5 + $0xac8] ss:$16 sps:$4 sm:$0xff]  }
 0x17a   :  { %2808 = vmatprep.subr.bf16.mxu0 %v4561_v50  ;;  %3095 = vmatprep.subr.bf16.mxu1 %v4564_v51  ;;  %v4651_v50 = vld [vmem:[#allocation5 + $0xae4] ss:$16 sps:$4 sm:$0xff]   ;;  %v4654_v51 = vld [vmem:[#allocation5 + $0xaec] ss:$16 sps:$4 sm:$0xff]  }
 0x17d   :  { %2809 = vmatpush1.bf16.msra.mxu0 %v4559_v52  ;;  %3096 = vmatpush1.bf16.msra.mxu1 %v4562_v53  ;;  %v4649_v52 = vld [vmem:[#allocation5 + $0xae0] ss:$16 sps:$4 sm:$0xff]   ;;  %v4652_v53 = vld [vmem:[#allocation5 + $0xae8] ss:$16 sps:$4 sm:$0xff]  }
 0x17e   :  { %2810 = vmatprep.subr.bf16.mxu0 %v4567_v54  ;;  %3097 = vmatprep.subr.bf16.mxu1 %v4570_v55  ;;  %v4657_v54 = vld [vmem:[#allocation5 + $0xb04] ss:$16 sps:$4 sm:$0xff]   ;;  %v4660_v55 = vld [vmem:[#allocation5 + $0xb0c] ss:$16 sps:$4 sm:$0xff]  }
 0x181   :  { %2811 = vmatpush1.bf16.msra.mxu0 %v4565_v56  ;;  %3098 = vmatpush1.bf16.msra.mxu1 %v4568_v57  ;;  %v4655_v56 = vld [vmem:[#allocation5 + $0xb00] ss:$16 sps:$4 sm:$0xff]   ;;  %v4658_v57 = vld [vmem:[#allocation5 + $0xb08] ss:$16 sps:$4 sm:$0xff]  }
 0x182   :  { %2812 = vmatprep.subr.bf16.mxu0 %v4573_v58  ;;  %3099 = vmatprep.subr.bf16.mxu1 %v4576_v59  ;;  %v4663_v58 = vld [vmem:[#allocation5 + $0xb24] ss:$16 sps:$4 sm:$0xff]   ;;  %v4666_v59 = vld [vmem:[#allocation5 + $0xb2c] ss:$16 sps:$4 sm:$0xff]  }
 0x185   :  { %2813 = vmatpush1.bf16.msra.mxu0 %v4571_v60  ;;  %3100 = vmatpush1.bf16.msra.mxu1 %v4574_v61  ;;  %v4661_v60 = vld [vmem:[#allocation5 + $0xb20] ss:$16 sps:$4 sm:$0xff]   ;;  %v4664_v61 = vld [vmem:[#allocation5 + $0xb28] ss:$16 sps:$4 sm:$0xff]  }
 0x186   :  { %2814 = vmatprep.subr.bf16.mxu0 %v4579_v62  ;;  %3101 = vmatprep.subr.bf16.mxu1 %v4582_v63  ;;  %v4669_v62 = vld [vmem:[#allocation5 + $0xb44] ss:$16 sps:$4 sm:$0xff]   ;;  %v4672_v63 = vld [vmem:[#allocation5 + $0xb4c] ss:$16 sps:$4 sm:$0xff]  }
 0x189   :  { %2815 = vmatpush1.bf16.msra.mxu0 %v4577_v0  ;;  %3102 = vmatpush1.bf16.msra.mxu1 %v4580_v1  ;;  %v4667_v0 = vld [vmem:[#allocation5 + $0xb40] ss:$16 sps:$4 sm:$0xff]   ;;  %v4670_v1 = vld [vmem:[#allocation5 + $0xb48] ss:$16 sps:$4 sm:$0xff]  }
 0x18a   :  { %2816 = vmatprep.subr.bf16.mxu0 %v4585_v2  ;;  %3103 = vmatprep.subr.bf16.mxu1 %v4588_v3  ;;  %v4675_v2 = vld [vmem:[#allocation5 + $0xb64] ss:$16 sps:$4 sm:$0xff]   ;;  %v4678_v3 = vld [vmem:[#allocation5 + $0xb6c] ss:$16 sps:$4 sm:$0xff]  }
 0x18d   :  { %2817 = vmatpush1.bf16.msra.mxu0 %v4583_v4  ;;  %3104 = vmatpush1.bf16.msra.mxu1 %v4586_v5  ;;  %v4673_v4 = vld [vmem:[#allocation5 + $0xb60] ss:$16 sps:$4 sm:$0xff]   ;;  %v4676_v5 = vld [vmem:[#allocation5 + $0xb68] ss:$16 sps:$4 sm:$0xff]  }
 0x18e   :  { %2818 = vmatprep.subr.bf16.mxu0 %v4591_v6  ;;  %3105 = vmatprep.subr.bf16.mxu1 %v4594_v7  ;;  %v4681_v6 = vld [vmem:[#allocation5 + $0xb84] ss:$16 sps:$4 sm:$0xff]   ;;  %v4684_v7 = vld [vmem:[#allocation5 + $0xb8c] ss:$16 sps:$4 sm:$0xff]  }
 0x191   :  { %2819 = vmatpush1.bf16.msra.mxu0 %v4589_v8  ;;  %3106 = vmatpush1.bf16.msra.mxu1 %v4592_v9  ;;  %v4679_v8 = vld [vmem:[#allocation5 + $0xb80] ss:$16 sps:$4 sm:$0xff]   ;;  %v4682_v9 = vld [vmem:[#allocation5 + $0xb88] ss:$16 sps:$4 sm:$0xff]  }
 0x192   :  { %2820 = vmatprep.subr.bf16.mxu0 %v4597_v10  ;;  %3107 = vmatprep.subr.bf16.mxu1 %v4600_v11  ;;  %v4687_v10 = vld [vmem:[#allocation5 + $0xba4] ss:$16 sps:$4 sm:$0xff]   ;;  %v4690_v11 = vld [vmem:[#allocation5 + $0xbac] ss:$16 sps:$4 sm:$0xff]  }
 0x195   :  { %2821 = vmatpush1.bf16.msra.mxu0 %v4595_v12  ;;  %3108 = vmatpush1.bf16.msra.mxu1 %v4598_v13  ;;  %v4685_v12 = vld [vmem:[#allocation5 + $0xba0] ss:$16 sps:$4 sm:$0xff]   ;;  %v4688_v13 = vld [vmem:[#allocation5 + $0xba8] ss:$16 sps:$4 sm:$0xff]  }
 0x196   :  { %2822 = vmatprep.subr.bf16.mxu0 %v4603_v14  ;;  %3109 = vmatprep.subr.bf16.mxu1 %v4606_v15  ;;  %v4693_v14 = vld [vmem:[#allocation5 + $0xbc4] ss:$16 sps:$4 sm:$0xff]   ;;  %v4696_v15 = vld [vmem:[#allocation5 + $0xbcc] ss:$16 sps:$4 sm:$0xff]  }
 0x199   :  { %2823 = vmatpush1.bf16.msra.mxu0 %v4601_v16  ;;  %3110 = vmatpush1.bf16.msra.mxu1 %v4604_v17  ;;  %v4691_v16 = vld [vmem:[#allocation5 + $0xbc0] ss:$16 sps:$4 sm:$0xff]   ;;  %v4694_v17 = vld [vmem:[#allocation5 + $0xbc8] ss:$16 sps:$4 sm:$0xff]  }
 0x19a   :  { %2833 = vmatprep.subr.bf16.mxu0 %v4609_v19  ;;  %3120 = vmatprep.subr.bf16.mxu1 %v4612_v20  ;;  %v4702_v19 = vld [vmem:[#allocation5 + $0xbec] ss:$16 sps:$4 sm:$0xff]   ;;  %v4697_v20 = vld [vmem:[#allocation5 + $0xbe0] ss:$16 sps:$4 sm:$0xff]  }
 0x19c   :  { %2825 = vmatmul.mubr.bf16.vlgmr.msra.gmra.mrb[0].mxu0 %v105_v21  ;;  %3112 = vmatmul.mubr.bf16.vlgmr.msra.gmra.mrb[0].mxu1 %v105_v21  ;;  %v4700_v21 = vld [vmem:[#allocation5 + $0xbe8] ss:$16 sps:$4 sm:$0xff]  }
 0x19d   :  { %2834 = vmatpush1.bf16.msra.mxu0 %v4607_v23  ;;  %3121 = vmatpush1.bf16.msra.mxu1 %v4610_v24  ;;  %v4705_v23 = vld [vmem:[#allocation5 + $0xc04] ss:$16 sps:$4 sm:$0xff]   ;;  %v4708_v24 = vld [vmem:[#allocation5 + $0xc0c] ss:$16 sps:$4 sm:$0xff]  }
 0x19e   :  { %2835 = vmatprep.subr.bf16.mxu0 %v4615_v25  ;;  %3122 = vmatprep.subr.bf16.mxu1 %v4618_v26  ;;  %v107_v25 = vpack.c.bf16 %v94_v22, %v94_v22  ;;  %v4703_v26 = vld [vmem:[#allocation5 + $0xc00] ss:$16 sps:$4 sm:$0xff]   ;;  %v4778_v22 = vld [vmem:[#allocation8 + $0xb0] sm:$0xff]  }
 0x19f   :  { %2865 = vmatprep.mubr.bf16.mxu0 %v108_v27  ;;  %3152 = vmatprep.mubr.bf16.mxu1 %v108_v27  ;;  %v4706_v27 = vld [vmem:[#allocation5 + $0xc08] ss:$16 sps:$4 sm:$0xff]  }
 0x1a1   :  { %2836 = vmatpush1.bf16.msra.mxu0 %v4613_v28  ;;  %3123 = vmatpush1.bf16.msra.mxu1 %v4616_v29  ;;  %v4711_v28 = vld [vmem:[#allocation5 + $0xc24] ss:$16 sps:$4 sm:$0xff]   ;;  %v4714_v29 = vld [vmem:[#allocation5 + $0xc2c] ss:$16 sps:$4 sm:$0xff]  }
 0x1a2   :  { %2837 = vmatprep.subr.bf16.mxu0 %v4621_v30  ;;  %3124 = vmatprep.subr.bf16.mxu1 %v4624_v31  ;;  %v4709_v30 = vld [vmem:[#allocation5 + $0xc20] ss:$16 sps:$4 sm:$0xff]   ;;  %v4712_v31 = vld [vmem:[#allocation5 + $0xc28] ss:$16 sps:$4 sm:$0xff]  }
 0x1a5   :  { %2838 = vmatpush1.bf16.msra.mxu0 %v4619_v32  ;;  %3125 = vmatpush1.bf16.msra.mxu1 %v4622_v33  ;;  %v4717_v32 = vld [vmem:[#allocation5 + $0xc44] ss:$16 sps:$4 sm:$0xff]   ;;  %v4720_v33 = vld [vmem:[#allocation5 + $0xc4c] ss:$16 sps:$4 sm:$0xff]  }
 0x1a6   :  { %2839 = vmatprep.subr.bf16.mxu0 %v4627_v34  ;;  %3126 = vmatprep.subr.bf16.mxu1 %v4630_v35  ;;  %v4932_v34 = vmov 0   ;;  %v4715_v35 = vld [vmem:[#allocation5 + $0xc40] ss:$16 sps:$4 sm:$0xff]  }
 0x1a9   :  { %2840 = vmatpush1.bf16.msra.mxu0 %v4625_v36  ;;  %3127 = vmatpush1.bf16.msra.mxu1 %v4628_v37  ;;  %v4718_v36 = vld [vmem:[#allocation5 + $0xc48] ss:$16 sps:$4 sm:$0xff]   ;;  %v4723_v37 = vld [vmem:[#allocation5 + $0xc64] ss:$16 sps:$4 sm:$0xff]  }
 0x1aa   :  { %2841 = vmatprep.subr.bf16.mxu0 %v4633_v38  ;;  %3128 = vmatprep.subr.bf16.mxu1 %v4636_v39  ;;  %v4726_v38 = vld [vmem:[#allocation5 + $0xc6c] ss:$16 sps:$4 sm:$0xff]   ;;  %v4721_v39 = vld [vmem:[#allocation5 + $0xc60] ss:$16 sps:$4 sm:$0xff]  }
 0x1ad   :  { %2842 = vmatpush1.bf16.msra.mxu0 %v4631_v40  ;;  %3129 = vmatpush1.bf16.msra.mxu1 %v4634_v41  ;;  %v4724_v40 = vld [vmem:[#allocation5 + $0xc68] ss:$16 sps:$4 sm:$0xff]   ;;  %v4729_v41 = vld [vmem:[#allocation5 + $0xc84] ss:$16 sps:$4 sm:$0xff]  }
 0x1ae   :  { %2843 = vmatprep.subr.bf16.mxu0 %v4639_v42  ;;  %3130 = vmatprep.subr.bf16.mxu1 %v4642_v43  ;;  %v4732_v42 = vld [vmem:[#allocation5 + $0xc8c] ss:$16 sps:$4 sm:$0xff]   ;;  %v4727_v43 = vld [vmem:[#allocation5 + $0xc80] ss:$16 sps:$4 sm:$0xff]  }
 0x1b1   :  { %2844 = vmatpush1.bf16.msra.mxu0 %v4637_v44  ;;  %3131 = vmatpush1.bf16.msra.mxu1 %v4640_v45  ;;  %v4730_v44 = vld [vmem:[#allocation5 + $0xc88] ss:$16 sps:$4 sm:$0xff]   ;;  %v4735_v45 = vld [vmem:[#allocation5 + $0xca4] ss:$16 sps:$4 sm:$0xff]  }
 0x1b2   :  { %2845 = vmatprep.subr.bf16.mxu0 %v4645_v46  ;;  %3132 = vmatprep.subr.bf16.mxu1 %v4648_v47  ;;  %v4738_v46 = vld [vmem:[#allocation5 + $0xcac] ss:$16 sps:$4 sm:$0xff]   ;;  %v4733_v47 = vld [vmem:[#allocation5 + $0xca0] ss:$16 sps:$4 sm:$0xff]  }
 0x1b5   :  { %2846 = vmatpush1.bf16.msra.mxu0 %v4643_v48  ;;  %3133 = vmatpush1.bf16.msra.mxu1 %v4646_v49  ;;  %v4736_v48 = vld [vmem:[#allocation5 + $0xca8] ss:$16 sps:$4 sm:$0xff]   ;;  %v4741_v49 = vld [vmem:[#allocation5 + $0xcc4] ss:$16 sps:$4 sm:$0xff]  }
 0x1b6   :  { %2847 = vmatprep.subr.bf16.mxu0 %v4651_v50  ;;  %3134 = vmatprep.subr.bf16.mxu1 %v4654_v51  ;;  %v4744_v50 = vld [vmem:[#allocation5 + $0xccc] ss:$16 sps:$4 sm:$0xff]   ;;  %v4739_v51 = vld [vmem:[#allocation5 + $0xcc0] ss:$16 sps:$4 sm:$0xff]  }
 0x1b9   :  { %2848 = vmatpush1.bf16.msra.mxu0 %v4649_v52  ;;  %3135 = vmatpush1.bf16.msra.mxu1 %v4652_v53  ;;  %v4742_v52 = vld [vmem:[#allocation5 + $0xcc8] ss:$16 sps:$4 sm:$0xff]   ;;  %v4747_v53 = vld [vmem:[#allocation5 + $0xce4] ss:$16 sps:$4 sm:$0xff]  }
 0x1ba   :  { %2849 = vmatprep.subr.bf16.mxu0 %v4657_v54  ;;  %3136 = vmatprep.subr.bf16.mxu1 %v4660_v55  ;;  %v4750_v54 = vld [vmem:[#allocation5 + $0xcec] ss:$16 sps:$4 sm:$0xff]   ;;  %v4745_v55 = vld [vmem:[#allocation5 + $0xce0] ss:$16 sps:$4 sm:$0xff]  }
 0x1bd   :  { %2850 = vmatpush1.bf16.msra.mxu0 %v4655_v56  ;;  %3137 = vmatpush1.bf16.msra.mxu1 %v4658_v57  ;;  %v4748_v56 = vld [vmem:[#allocation5 + $0xce8] ss:$16 sps:$4 sm:$0xff]  }
 0x1be   :  { %2851 = vmatprep.subr.bf16.mxu0 %v4663_v58  ;;  %3138 = vmatprep.subr.bf16.mxu1 %v4666_v59  ;;  %v96_v57 = vld [vmem:[#allocation2 + $0x60] sm:$0xff]  ;;  %v4751_v58 = vld [vmem:[#allocation8 + $0x40] sm:$0xff]  }
 0x1bf   :  { %v4752_v59 = vld [vmem:[#allocation8 + $0xc0] sm:$0xff]  }
 0x1c1   :  { %2852 = vmatpush1.bf16.msra.mxu0 %v4661_v60  ;;  %3139 = vmatpush1.bf16.msra.mxu1 %v4664_v61  ;;  %v109_v60 = vpack.c.bf16 %v96_v57, %v96_v57  ;;  %v4753_v61 = vld [vmem:[#allocation8] sm:$0xff]  }
 0x1c2   :  { %2853 = vmatprep.subr.bf16.mxu0 %v4669_v62  ;;  %3140 = vmatprep.subr.bf16.mxu1 %v4672_v63  ;;  %v4754_v62 = vld [vmem:[#allocation8 + $0x80] sm:$0xff]   ;;  %v4755_v63 = vld [vmem:[#allocation8 + $0x48] sm:$0xff]  }
 0x1c5   :  { %2854 = vmatpush1.bf16.msra.mxu0 %v4667_v0  ;;  %3141 = vmatpush1.bf16.msra.mxu1 %v4670_v1  ;;  %v4756_v0 = vld [vmem:[#allocation8 + $0xc8] sm:$0xff]  }
 0x1c6   :  { %2855 = vmatprep.subr.bf16.mxu0 %v4675_v2  ;;  %3142 = vmatprep.subr.bf16.mxu1 %v4678_v3  ;;  %v4757_v1 = vld [vmem:[#allocation8 + $0x8] sm:$0xff]   ;;  %v4759_v3 = vld [vmem:[#allocation8 + $0x50] sm:$0xff]  }
 0x1c7   :  { %v4758_v2 = vld [vmem:[#allocation8 + $0x88] sm:$0xff]  }
 0x1c9   :  { %2856 = vmatpush1.bf16.msra.mxu0 %v4673_v4  ;;  %3143 = vmatpush1.bf16.msra.mxu1 %v4676_v5  ;;  %v4760_v4 = vld [vmem:[#allocation8 + $0xd0] sm:$0xff]  }
 0x1ca   :  { %2857 = vmatprep.subr.bf16.mxu0 %v4681_v6  ;;  %3144 = vmatprep.subr.bf16.mxu1 %v4684_v7  ;;  %v4761_v5 = vld [vmem:[#allocation8 + $0x10] sm:$0xff]   ;;  %v4763_v7 = vld [vmem:[#allocation8 + $0x58] sm:$0xff]  }
 0x1cb   :  { %v4762_v6 = vld [vmem:[#allocation8 + $0x90] sm:$0xff]  }
 0x1cd   :  { %2858 = vmatpush1.bf16.msra.mxu0 %v4679_v8  ;;  %3145 = vmatpush1.bf16.msra.mxu1 %v4682_v9  ;;  %v4764_v8 = vld [vmem:[#allocation8 + $0xd8] sm:$0xff]  }
 0x1ce   :  { %2859 = vmatprep.subr.bf16.mxu0 %v4687_v10  ;;  %3146 = vmatprep.subr.bf16.mxu1 %v4690_v11  ;;  %v4765_v9 = vld [vmem:[#allocation8 + $0x18] sm:$0xff]   ;;  %v4767_v11 = vld [vmem:[#allocation8 + $0x60] sm:$0xff]  }
 0x1cf   :  { %v4766_v10 = vld [vmem:[#allocation8 + $0x98] sm:$0xff]  }
 0x1d1   :  { %2860 = vmatpush1.bf16.msra.mxu0 %v4685_v12  ;;  %3147 = vmatpush1.bf16.msra.mxu1 %v4688_v13  ;;  %v4768_v12 = vld [vmem:[#allocation8 + $0xe0] sm:$0xff]  }
 0x1d2   :  { %2861 = vmatprep.subr.bf16.mxu0 %v4693_v14  ;;  %3148 = vmatprep.subr.bf16.mxu1 %v4696_v15  ;;  %v4769_v13 = vld [vmem:[#allocation8 + $0x20] sm:$0xff]   ;;  %v4771_v15 = vld [vmem:[#allocation8 + $0x68] sm:$0xff]  }
 0x1d3   :  { %v4770_v14 = vld [vmem:[#allocation8 + $0xa0] sm:$0xff]  }
 0x1d5   :  { %2862 = vmatpush1.bf16.msra.mxu0 %v4691_v16  ;;  %3149 = vmatpush1.bf16.msra.mxu1 %v4694_v17  ;;  %v4772_v16 = vld [vmem:[#allocation8 + $0xe8] sm:$0xff]  }
 0x1d6   :  { %2863 = vmatprep.subr.bf16.mxu0 %v4699_v18  ;;  %3150 = vmatprep.subr.bf16.mxu1 %v4702_v19  ;;  %v4773_v17 = vld [vmem:[#allocation8 + $0x28] sm:$0xff]   ;;  %v4775_v19 = vld [vmem:[#allocation8 + $0x70] sm:$0xff]  }
 0x1d7   :  { %v4774_v18 = vld [vmem:[#allocation8 + $0xa8] sm:$0xff]  }
 0x1d9   :  { %2864 = vmatpush1.bf16.msra.mxu0 %v4697_v20  ;;  %3151 = vmatpush1.bf16.msra.mxu1 %v4700_v21  ;;  %v4776_v20 = vld [vmem:[#allocation8 + $0xf0] sm:$0xff]  }
 0x1da   :  { %2874 = vmatprep.subr.bf16.mxu0 %v4705_v23  ;;  %3161 = vmatprep.subr.bf16.mxu1 %v4708_v24  ;;  %v4777_v21 = vld [vmem:[#allocation8 + $0x30] sm:$0xff]   ;;  %v4779_v23 = vld [vmem:[#allocation8 + $0x78] sm:$0xff]  }
 0x1db   :  { %v4780_v24 = vld [vmem:[#allocation8 + $0xf8] sm:$0xff]  }
 0x1dc   :  { %2866 = vmatmul.mubr.bf16.vlgmr.msra.gmra.mrb[0].mxu0 %v107_v25  ;;  %3153 = vmatmul.mubr.bf16.vlgmr.msra.gmra.mrb[0].mxu1 %v107_v25  ;;  %v4781_v25 = vld [vmem:[#allocation8 + $0x38] sm:$0xff]  }
 0x1dd   :  { %2875 = vmatpush1.bf16.msra.mxu0 %v4703_v26  ;;  %3162 = vmatpush1.bf16.msra.mxu1 %v4706_v27  ;;  %v4782_v26 = vld [vmem:[#allocation8 + $0xb8] sm:$0xff]   ;;  %v528_v27 = vlaneseq }
 0x1de   :  { %2876 = vmatprep.subr.bf16.mxu0 %v4711_v28  ;;  %3163 = vmatprep.subr.bf16.mxu1 %v4714_v29 }
 0x1df   :  { %2906 = vmatprep.mubr.bf16.mxu0 %v4932_v34  ;;  %3193 = vmatprep.mubr.bf16.mxu1 %v4932_v34  ;;  %v529_v28 = vshrl.u32 %v528_v27, 7 }
 0x1e1   :  { %2877 = vmatpush1.bf16.msra.mxu0 %v4709_v30  ;;  %3164 = vmatpush1.bf16.msra.mxu1 %v4712_v31  ;;  %v530_v29 = vsub.s32 0, %v529_v28  ;;  %v538_v30 = vsub.s32 2, %v529_v28  ;;  %v526_v31 = vld [vmem:[#allocation7] sm:$0xf] }
 0x1e2   :  { %2878 = vmatprep.subr.bf16.mxu0 %v4717_v32  ;;  %3165 = vmatprep.subr.bf16.mxu1 %v4720_v33  ;;  %v534_v32 = vsub.s32 1, %v529_v28  ;;  %v542_v33 = vsub.s32 3, %v529_v28 }
 0x1e3   :  { %v531_v34 = vrot.slane %v526_v31, %v530_v29 }
 0x1e5   :  { %2879 = vmatpush1.bf16.msra.mxu0 %v4715_v35  ;;  %3166 = vmatpush1.bf16.msra.mxu1 %v4718_v36  ;;  %v539_v35 = vrot.slane %v526_v31, %v538_v30  ;;  %v535_v36 = vrot.slane %v526_v31, %v534_v32 }
 0x1e6   :  { %2880 = vmatprep.subr.bf16.mxu0 %v4723_v37  ;;  %3167 = vmatprep.subr.bf16.mxu1 %v4726_v38  ;;  %v543_v37 = vrot.slane %v526_v31, %v542_v33 }
 0x1e9   :  { %2881 = vmatpush1.bf16.msra.mxu0 %v4721_v39  ;;  %3168 = vmatpush1.bf16.msra.mxu1 %v4724_v40 }
 0x1ea   :  { %2882 = vmatprep.subr.bf16.mxu0 %v4729_v41  ;;  %3169 = vmatprep.subr.bf16.mxu1 %v4732_v42 }
 0x1ed   :  { %2883 = vmatpush1.bf16.msra.mxu0 %v4727_v43  ;;  %3170 = vmatpush1.bf16.msra.mxu1 %v4730_v44 }
 0x1ee   :  { %2884 = vmatprep.subr.bf16.mxu0 %v4735_v45  ;;  %3171 = vmatprep.subr.bf16.mxu1 %v4738_v46 }
 0x1f1   :  { %2885 = vmatpush1.bf16.msra.mxu0 %v4733_v47  ;;  %3172 = vmatpush1.bf16.msra.mxu1 %v4736_v48 }
 0x1f2   :  { %2886 = vmatprep.subr.bf16.mxu0 %v4741_v49  ;;  %3173 = vmatprep.subr.bf16.mxu1 %v4744_v50 }
 0x1f5   :  { %2887 = vmatpush1.bf16.msra.mxu0 %v4739_v51  ;;  %3174 = vmatpush1.bf16.msra.mxu1 %v4742_v52 }
 0x1f6   :  { %2888 = vmatprep.subr.bf16.mxu0 %v4747_v53  ;;  %3175 = vmatprep.subr.bf16.mxu1 %v4750_v54 }
 0x1f9   :  { %2889 = vmatpush1.bf16.msra.mxu0 %v4745_v55  ;;  %3176 = vmatpush1.bf16.msra.mxu1 %v4748_v56 }
 0x1fa   :  { %4020 = vmatprep.subr.bf16.mxu0 %v4751_v58  ;;  %4042 = vmatprep.subr.bf16.mxu1 %v4752_v59 }
 0x1fc   :  { %2907 = vmatmul.mubr.bf16.vlgmr.msra.gmra.mrb[0].mxu0 %v109_v60  ;;  %3194 = vmatmul.mubr.bf16.vlgmr.msra.gmra.mrb[0].mxu1 %v109_v60  ;;  %v3987_v60 = vld [vmem:[#allocation10] ss:$0 sm:$0xff] }
 0x1fd   :  { %4021 = vmatpush3.bf16.msra.mxu0 %v4753_v61  ;;  %4043 = vmatpush3.bf16.msra.mxu1 %v4754_v62 }
 0x1fe   :  { %4022 = vmatprep.subr.bf16.mxu0 %v4755_v63  ;;  %4044 = vmatprep.subr.bf16.mxu1 %v4756_v0 }
 0x201   :  { %4023 = vmatpush3.bf16.msra.mxu0 %v4757_v1  ;;  %4045 = vmatpush3.bf16.msra.mxu1 %v4758_v2 }
 0x202   :  { %4024 = vmatprep.subr.bf16.mxu0 %v4759_v3  ;;  %4046 = vmatprep.subr.bf16.mxu1 %v4760_v4 }
 0x205   :  { %4025 = vmatpush3.bf16.msra.mxu0 %v4761_v5  ;;  %4047 = vmatpush3.bf16.msra.mxu1 %v4762_v6 }
 0x206   :  { %4026 = vmatprep.subr.bf16.mxu0 %v4763_v7  ;;  %4048 = vmatprep.subr.bf16.mxu1 %v4764_v8 }
 0x209   :  { %4027 = vmatpush3.bf16.msra.mxu0 %v4765_v9  ;;  %4049 = vmatpush3.bf16.msra.mxu1 %v4766_v10 }
 0x20a   :  { %4028 = vmatprep.subr.bf16.mxu0 %v4767_v11  ;;  %4050 = vmatprep.subr.bf16.mxu1 %v4768_v12 }
 0x20d   :  { %4029 = vmatpush3.bf16.msra.mxu0 %v4769_v13  ;;  %4051 = vmatpush3.bf16.msra.mxu1 %v4770_v14 }
 0x20e   :  { %4030 = vmatprep.subr.bf16.mxu0 %v4771_v15  ;;  %4052 = vmatprep.subr.bf16.mxu1 %v4772_v16 }
 0x211   :  { %4031 = vmatpush3.bf16.msra.mxu0 %v4773_v17  ;;  %4053 = vmatpush3.bf16.msra.mxu1 %v4774_v18 }
 0x212   :  { %4032 = vmatprep.subr.bf16.mxu0 %v4775_v19  ;;  %4054 = vmatprep.subr.bf16.mxu1 %v4776_v20 }
 0x215   :  { %4033 = vmatpush3.bf16.msra.mxu0 %v4777_v21  ;;  %4055 = vmatpush3.bf16.msra.mxu1 %v4778_v22 }
 0x216   :  { %4034 = vmatprep.subr.bf16.mxu0 %v4779_v23  ;;  %4056 = vmatprep.subr.bf16.mxu1 %v4780_v24 }
 0x219   :  { %4035 = vmatpush3.bf16.msra.mxu0 %v4781_v25  ;;  %4057 = vmatpush3.bf16.msra.mxu1 %v4782_v26 }
 0x2cf   :  { %v2908_v38 = vpop.f32.mrb[0].mxu0  ;;  %v3195_v39 = vpop.f32.mrb[0].mxu1 }
 0x2d0   :  { %v4064_v40 = vadd.f32 %v2908_v38, %v531_v34  ;;  %v4066_v41 = vadd.f32 %v3195_v39, %v539_v35  ;;  %v2910_v42 = vpop.f32.mrb[1].mxu0  ;;  %v3197_v43 = vpop.f32.mrb[1].mxu1 }
 0x2d1   :  { %v4065_v44 = vadd.f32 %v2910_v42, %v535_v36  ;;  %v4067_v45 = vadd.f32 %v3197_v43, %v543_v37  ;;  %v2912_v46 = vpop.f32.mrb[2].mxu0  ;;  %v3199_v47 = vpop.f32.mrb[2].mxu1 }
 0x2d2   :  { %v3202_v48 = vmax.f32 %v4064_v40, 0.0  ;;  %v3204_v49 = vmax.f32 %v4066_v41, 0.0  ;;  %v2913_v50 = vpop.f32.mrb[3].mxu0  ;;  %v3200_v51 = vpop.f32.mrb[3].mxu1 }
 0x2d3   :  { %v3203_v52 = vmax.f32 %v4065_v44, 0.0  ;;  %v3205_v53 = vmax.f32 %v4067_v45, 0.0 }
 0x2d4   :  { %v3206_v56 = vpack.c.bf16 %v3202_v48, %v3202_v48  ;;  %v3208_v57 = vpack.c.bf16 %v3204_v49, %v3204_v49 }
 0x2d5   :  { %v3207_v54 = vpack.c.bf16 %v3203_v52, %v3203_v52  ;;  %v3209_v55 = vpack.c.bf16 %v3205_v53, %v3205_v53 }
 0x2d7   :  { %3505 = vmatprep.mubr.bf16.mxu0 %v3207_v54  ;;  %3545 = vmatprep.mubr.bf16.mxu1 %v3209_v55 }
 0x2d8   :  { %3506 = vmatmul.mubr.bf16.vlgmr.msra.gmra.mrb[4].mxu0 %v3206_v56  ;;  %3546 = vmatmul.mubr.bf16.vlgmr.msra.gmra.mrb[4].mxu1 %v3208_v57 }
 0x3ab   :  { %v4036_v58 = vpop.f32.mrb[4].mxu0  ;;  %v4058_v59 = vpop.f32.mrb[4].mxu1 }
 0x3ac   :  { %v4037_v61 = vpop.f32.mrb[5].mxu0  ;;  %v4059_v62 = vpop.f32.mrb[5].mxu1 }
 0x3ad   :  { %v4038_v63 = vadd.f32 %v4037_v61, %v4036_v58  ;;  %v4060_v0 = vadd.f32 %v4059_v62, %v4058_v59  ;;  %v4039_v1 = vpop.f32.mrb[6].mxu0  ;;  %v4061_v2 = vpop.f32.mrb[6].mxu1 }
 0x3ae   :  { %v4040_v3 = vpop.f32.mrb[7].mxu0  ;;  %v4062_v4 = vpop.f32.mrb[7].mxu1 }
 0x3af   :  { %v3508_v5 = vadd.f32 %v4038_v63, %v3987_v60 }
 0x3b1   :  { %v3548_v6 = vadd.f32 %v4060_v0, %v3508_v5 }
 0x3b3   :  { %3553 = vst [vmem:[#allocation11] sm:$0xff] %v3548_v6 }
 0x3b4   :  { %4904 = shalt.err (!%p4901_p2)
}
 0x3b5   :  { %s4905_s6 = scalar_lea.hbm %s5041_s5, 128 }
 0x3b6   :  { %p4906_p3 = scmp.ne.s32.totalorder %s5041_s5, %s4905_s6  ;;  %p4909_p4 = scmp.lt.u32.totalorder %s4905_s6, %s5041_s5 }
 0x3b8   :  { %p4911_p5 = pnand %p4909_p4, %p4906_p3 }
 0x3ba   :  { %4914 = shalt.err (!%p4911_p5)
}
 0x3bb   :  { %3563 = dma.vmem_to_hbm [thread:$0]  %s3561_s28, 128, %s5041_s5, [#allocation4]  }
 0x3bc   :  { %4921 = dma.done.wait [#allocation4], 128  }
 0x3bd   :  { %4922 = vsyncadd [#allocation4], 4294967168 }
 0x3be   :  { %3567 = vsyncpa [#allocation3], 1 }
 0x3bf   :  { %3568 = vsyncpa [#allocation6], 1 }
 0x3c0   :  { %3569 = vsyncpa [#allocation9], 1 }
 0x3c1   :  { %3570 = vsyncpa [#allocation4], 1 }

</bundles_post_ra>
